<compile_context>
chip_gen: v7x
topology: tpu7x:2x2x1
jax: 0.10.0
libtpu: 0.0.40
codegen_flags: <defaults>
</compile_context>

<pallas_src>
import math

import numpy as np
import jax
import jax.numpy as jnp
from jax import lax
from jax.experimental import pallas as pl
from jax.experimental.pallas import tpu as pltpu  # noqa: F401

# ---------------- model hyper-params (small, consistent with the module) ----------------
DIM      = 32                     # dim
DEPTH    = 2                      # depth
HEADS    = 2                      # heads
DIM_HEAD = 16                     # dim_head
MLP_DIM  = 64                     # mlp_dim
INNER    = HEADS * DIM_HEAD       # 32
SCALE    = DIM_HEAD ** (-0.5)
LN_EPS   = 1e-5

BATCH = 2
SEQ   = 8
BN    = BATCH * SEQ               # 16 rows processed as one (BN, DIM) slab

# ---------------- packed-slab layout constants (128-lane aligned sections) --------------
QKV_OFF = 0                       # (DIM,      3*INNER) = (32, 96)
OUT_OFF = 128                     # (INNER,    DIM)     = (32, 32)
FF1_OFF = 256                     # (DIM,      MLP_DIM) = (32, 64)
FF2_OFF = 384                     # (MLP_DIM,  DIM)     = (64, 32)
W_ROWS  = 64
W_COLS  = 512

# vb slab: rows [0:BN] hold the additive attention mask; then 8 rows per layer.
VB_ROWS = BN + DEPTH * 8
R_LN1G, R_LN1B, R_BOUT, R_LN2G, R_LN2B, R_BFF1, R_BFF2 = range(7)


def _layer_norm(x, gamma, beta):
    mu  = jnp.mean(x, axis=-1, keepdims=True)
    var = jnp.mean((x - mu) * (x - mu), axis=-1, keepdims=True)
    return (x - mu) * lax.rsqrt(var + LN_EPS) * gamma + beta


# ---------------- single fused kernel: full forward pass, whole batch -------------------
def transformer_kernel(x_ref, w_ref, vb_ref, o_ref):
    x = x_ref[...].astype(jnp.float32)                       # (BN, DIM)
    mask = vb_ref[0:BN, 0:BN]                                 # additive (0 / -1e30)
    inv_sqrt2 = jnp.float32(1.0 / math.sqrt(2.0))

    for l in range(DEPTH):                                    # DEPTH=2, unrolled
        base = BN + l * 8

        # ---------- PreNorm + multi-head self attention ----------
        ln1_g = vb_ref[base + R_LN1G:base + R_LN1G + 1, 0:DIM]     # (1, DIM)
        ln1_b = vb_ref[base + R_LN1B:base + R_LN1B + 1, 0:DIM]
        xn = _layer_norm(x, ln1_g, ln1_b)                          # (BN, DIM)

        # fused QKV projection: one (16,32)@(32,96) MXU pass
        qkv = jnp.dot(xn, w_ref[l, 0:DIM, QKV_OFF:QKV_OFF + 3 * INNER],
                      preferred_element_type=jnp.float32)          # (BN, 3*INNER)

        ohs = []
        for h in range(HEADS):                                     # HEADS=2, unrolled
            qh = qkv[:, h * DIM_HEAD:(h + 1) * DIM_HEAD]
            kh = qkv[:, INNER + h * DIM_HEAD:INNER + (h + 1) * DIM_HEAD]
            vh = qkv[:, 2 * INNER + h * DIM_HEAD:2 * INNER + (h + 1) * DIM_HEAD]
            dots = lax.dot_general(qh, kh, (((1,), (1,)), ((), ())),
                                   preferred_element_type=jnp.float32) * SCALE + mask
            m = jnp.max(dots, axis=-1, keepdims=True)
            e = jnp.exp(dots - m)
            p = e * pl.reciprocal(jnp.sum(e, axis=-1, keepdims=True), approx=True)
            ohs.append(jnp.dot(p, vh, preferred_element_type=jnp.float32))  # (BN, dh)

        o_cat = jnp.concatenate(ohs, axis=-1)                      # (BN, INNER), head-major
        b_out = vb_ref[base + R_BOUT:base + R_BOUT + 1, 0:DIM]
        attn_out = jnp.dot(o_cat, w_ref[l, 0:INNER, OUT_OFF:OUT_OFF + DIM],
                           preferred_element_type=jnp.float32) + b_out
        x = x + attn_out                                           # residual 1

        # ---------- PreNorm + FeedForward ----------
        ln2_g = vb_ref[base + R_LN2G:base + R_LN2G + 1, 0:DIM]
        ln2_b = vb_ref[base + R_LN2B:base + R_LN2B + 1, 0:DIM]
        xn2 = _layer_norm(x, ln2_g, ln2_b)

        b_ff1 = vb_ref[base + R_BFF1:base + R_BFF1 + 1, 0:MLP_DIM]
        h1 = jnp.dot(xn2, w_ref[l, 0:DIM, FF1_OFF:FF1_OFF + MLP_DIM],
                     preferred_element_type=jnp.float32) + b_ff1
        # exact GELU (matches torch.nn.GELU() default): 0.5*x*(1+erf(x/sqrt(2)))
        h1 = 0.5 * h1 * (1.0 + lax.erf(h1 * inv_sqrt2))

        b_ff2 = vb_ref[base + R_BFF2:base + R_BFF2 + 1, 0:DIM]
        ff = jnp.dot(h1, w_ref[l, 0:MLP_DIM, FF2_OFF:FF2_OFF + DIM],
                     preferred_element_type=jnp.float32) + b_ff2
        x = x + ff                                                 # residual 2

    o_ref[...] = x.astype(o_ref.dtype)


# ---------------- wrapper: one pallas_call for the whole forward pass -------------------
def _transformer_forward(x, w_slab, vb_slab):
    B, N, D = x.shape
    x2 = x.reshape(B * N, D)                                  # layout plumbing outside kernel

    flops_layer = (2 * BN * DIM * 3 * INNER            # fused QKV
                   + HEADS * 2 * (2 * BN * BN * DIM_HEAD)  # QK^T and PV
                   + 2 * BN * INNER * DIM               # out proj
                   + 2 * BN * DIM * MLP_DIM             # ff1
                   + 2 * BN * MLP_DIM * DIM)            # ff2
    cost = pl.CostEstimate(
        flops=DEPTH * flops_layer,
        transcendentals=DEPTH * (HEADS * BN * BN + BN * MLP_DIM + 4 * BN),
        bytes_accessed=2 * B * N * D * 4 + w_slab.size * 4 + vb_slab.size * 4,
    )

    out = pl.pallas_call(
        transformer_kernel,
        out_shape=jax.ShapeDtypeStruct((B * N, D), x.dtype),
        input_output_aliases={0: 0},      # x buffer reused for the output
        cost_estimate=cost,
        # no grid: single invocation, all operands resident in VMEM as full blocks
    )(x2, w_slab, vb_slab)
    return out.reshape(B, N, D)


transformer_forward = jax.jit(_transformer_forward)


# ---------------- deterministic parameter init (synthetic; shapes match __init__) --------
def _uniform(key, shape, fan_in):
    bound = 1.0 / math.sqrt(fan_in)
    return jax.random.uniform(key, shape, jnp.float32, -bound, bound)


def init_params(key):
    """Per-layer params in x@W layout, mirroring the PyTorch module's parameters."""
    layers = []
    for _ in range(DEPTH):
        keys = jax.random.split(key, 8)
        key = keys[-1]
        layers.append(dict(
            ln1_g=jnp.ones((DIM,), jnp.float32),
            ln1_b=jnp.zeros((DIM,), jnp.float32),
            w_qkv=_uniform(keys[0], (DIM, 3 * INNER), DIM),   # to_qkv (no bias)
            w_out=_uniform(keys[1], (INNER, DIM), INNER),     # to_out weight
            b_out=_uniform(keys[2], (DIM,), INNER),           # to_out bias
            ln2_g=jnp.ones((DIM,), jnp.float32),
            ln2_b=jnp.zeros((DIM,), jnp.float32),
            w_ff1=_uniform(keys[3], (DIM, MLP_DIM), DIM),
            b_ff1=_uniform(keys[4], (MLP_DIM,), DIM),
            w_ff2=_uniform(keys[5], (MLP_DIM, DIM), MLP_DIM),
            b_ff2=_uniform(keys[6], (DIM,), MLP_DIM),
        ))
    return layers


def pack_params(layers):
    """Pack all weights into two lane-dense slabs (pure layout plumbing, outside kernel)."""
    # --- matmul-weight slab: (DEPTH, 64, 512), 128-lane-aligned sections ---
    w_slab = jnp.zeros((DEPTH, W_ROWS, W_COLS), jnp.float32)
    for l, lyr in enumerate(layers):
        w_slab = w_slab.at[l, 0:DIM,     QKV_OFF:QKV_OFF + 3 * INNER].set(lyr['w_qkv'])
        w_slab = w_slab.at[l, 0:INNER,   OUT_OFF:OUT_OFF + DIM].set(lyr['w_out'])
        w_slab = w_slab.at[l, 0:DIM,     FF1_OFF:FF1_OFF + MLP_DIM].set(lyr['w_ff1'])
        w_slab = w_slab.at[l, 0:MLP_DIM, FF2_OFF:FF2_OFF + DIM].set(lyr['w_ff2'])

    # --- vector slab: additive attention mask + all gammas/betas/biases ---
    row_b = np.arange(BN) // SEQ
    add_mask = np.where(row_b[:, None] == row_b[None, :], 0.0, -1e30).astype(np.float32)
    vb = jnp.zeros((VB_ROWS, 128), jnp.float32)
    vb = vb.at[0:BN, 0:BN].set(jnp.asarray(add_mask))
    for l, lyr in enumerate(layers):
        base = BN + l * 8
        vb = vb.at[base + R_LN1G, 0:DIM].set(lyr['ln1_g'])
        vb = vb.at[base + R_LN1B, 0:DIM].set(lyr['ln1_b'])
        vb = vb.at[base + R_BOUT, 0:DIM].set(lyr['b_out'])
        vb = vb.at[base + R_LN2G, 0:DIM].set(lyr['ln2_g'])
        vb = vb.at[base + R_LN2B, 0:DIM].set(lyr['ln2_b'])
        vb = vb.at[base + R_BFF1, 0:MLP_DIM].set(lyr['b_ff1'])
        vb = vb.at[base + R_BFF2, 0:DIM].set(lyr['b_ff2'])
    return w_slab, vb


# ---------------- pure-JAX reference (mirrors the PyTorch module, eval mode) --------------
def reference_forward(x, layers):
    B, N, _ = x.shape

    def ln(v, g, b):
        mu = v.mean(-1, keepdims=True)
        var = ((v - mu) ** 2).mean(-1, keepdims=True)
        return (v - mu) / jnp.sqrt(var + LN_EPS) * g + b

    def to_heads(t):
        return t.reshape(B, N, HEADS, DIM_HEAD).transpose(0, 2, 1, 3)

    for lyr in layers:
        xn = ln(x, lyr['ln1_g'], lyr['ln1_b'])
        qkv = xn @ lyr['w_qkv']
        q, k, v = map(to_heads, jnp.split(qkv, 3, axis=-1))
        dots = jnp.einsum('bhid,bhjd->bhij', q, k) * SCALE
        attn = jax.nn.softmax(dots, axis=-1)
        o = jnp.einsum('bhij,bhjd->bhid', attn, v)
        o = o.transpose(0, 2, 1, 3).reshape(B, N, INNER)
        x = x + o @ lyr['w_out'] + lyr['b_out']

        xn2 = ln(x, lyr['ln2_g'], lyr['ln2_b'])
        h1 = xn2 @ lyr['w_ff1'] + lyr['b_ff1']
        h1 = 0.5 * h1 * (1.0 + lax.erf(h1 / math.sqrt(2.0)))
        x = x + h1 @ lyr['w_ff2'] + lyr['b_ff2']
    return x


if __name__ == "__main__":
    root = jax.random.PRNGKey(0)
    k_x, k_p = jax.random.split(root)
    x = jax.random.normal(k_x, (BATCH, SEQ, DIM), jnp.float32)

    layers = init_params(k_p)
    w_slab, vb_slab = pack_params(layers)

    out = transformer_forward(x, w_slab, vb_slab)
    out = jax.block_until_ready(out)

    assert out.shape == (BATCH, SEQ, DIM)
    assert bool(jnp.all(jnp.isfinite(out)))

    ref = reference_forward(x, layers)
    assert bool(jnp.allclose(out, ref, rtol=2e-2, atol=2e-2)), "mismatch vs pure-JAX reference"

    print("KERNEL_OK")
</pallas_src>

<mosaic_0001>
module attributes {stable_mosaic.version = 11 : i64} {
  func.func @transformer_kernel(%arg0: memref<16x32xf32, #tpu.memory_space<vmem>>, %arg1: memref<2x64x512xf32, #tpu.memory_space<vmem>>, %arg2: memref<32x128xf32, #tpu.memory_space<vmem>>, %arg3: memref<16x32xf32, #tpu.memory_space<vmem>>) attributes {dimension_semantics = [], scalar_prefetch = 0 : i64, scratch_operands = 0 : i64, tpu.core_type = #tpu.core_type<tc>} {
    %c0 = arith.constant 0 : index
    %c0_0 = arith.constant 0 : index
    %0 = vector.load %arg0[%c0, %c0_0] : memref<16x32xf32, #tpu.memory_space<vmem>>, vector<16x32xf32>
    %c0_1 = arith.constant 0 : index
    %c0_2 = arith.constant 0 : index
    %1 = vector.load %arg2[%c0_1, %c0_2] : memref<32x128xf32, #tpu.memory_space<vmem>>, vector<16x16xf32>
    %c16 = arith.constant 16 : index
    %c0_3 = arith.constant 0 : index
    %2 = vector.load %arg2[%c16, %c0_3] : memref<32x128xf32, #tpu.memory_space<vmem>>, vector<1x32xf32>
    %c17 = arith.constant 17 : index
    %c0_4 = arith.constant 0 : index
    %3 = vector.load %arg2[%c17, %c0_4] : memref<32x128xf32, #tpu.memory_space<vmem>>, vector<1x32xf32>
    %cst = arith.constant dense<0.000000e+00> : vector<16xf32>
    %4 = vector.multi_reduction <add>, %0, %cst [1] : vector<16x32xf32> to vector<16xf32>
    %5 = vector.shape_cast %4 : vector<16xf32> to vector<16x1xf32>
    %cst_5 = arith.constant 3.200000e+01 : f32
    %6 = vector.broadcast %cst_5 : f32 to vector<16x1xf32>
    %7 = arith.divf %5, %6 : vector<16x1xf32>
    %8 = vector.broadcast %7 : vector<16x1xf32> to vector<16x32xf32>
    %9 = arith.subf %0, %8 : vector<16x32xf32>
    %10 = vector.broadcast %7 : vector<16x1xf32> to vector<16x32xf32>
    %11 = arith.subf %0, %10 : vector<16x32xf32>
    %12 = arith.mulf %9, %11 : vector<16x32xf32>
    %cst_6 = arith.constant dense<0.000000e+00> : vector<16xf32>
    %13 = vector.multi_reduction <add>, %12, %cst_6 [1] : vector<16x32xf32> to vector<16xf32>
    %14 = vector.shape_cast %13 : vector<16xf32> to vector<16x1xf32>
    %cst_7 = arith.constant 3.200000e+01 : f32
    %15 = vector.broadcast %cst_7 : f32 to vector<16x1xf32>
    %16 = arith.divf %14, %15 : vector<16x1xf32>
    %17 = vector.broadcast %7 : vector<16x1xf32> to vector<16x32xf32>
    %18 = arith.subf %0, %17 : vector<16x32xf32>
    %cst_8 = arith.constant 9.99999974E-6 : f32
    %19 = vector.broadcast %cst_8 : f32 to vector<16x1xf32>
    %20 = arith.addf %16, %19 : vector<16x1xf32>
    %21 = math.rsqrt %20 : vector<16x1xf32>
    %22 = vector.broadcast %21 : vector<16x1xf32> to vector<16x32xf32>
    %23 = arith.mulf %18, %22 : vector<16x32xf32>
    %24 = vector.broadcast %2 : vector<1x32xf32> to vector<16x32xf32>
    %25 = arith.mulf %23, %24 : vector<16x32xf32>
    %26 = vector.broadcast %3 : vector<1x32xf32> to vector<16x32xf32>
    %27 = arith.addf %25, %26 : vector<16x32xf32>
    %c0_9 = arith.constant 0 : index
    %c0_10 = arith.constant 0 : index
    %c0_11 = arith.constant 0 : index
    %28 = vector.load %arg1[%c0_9, %c0_10, %c0_11] : memref<2x64x512xf32, #tpu.memory_space<vmem>>, vector<1x32x96xf32>
    %29 = vector.shape_cast %28 : vector<1x32x96xf32> to vector<32x96xf32>
    %cst_12 = arith.constant dense<0.000000e+00> : vector<16x96xf32>
    %30 = tpu.matmul %27, %29, %cst_12 {dimension_numbers = #tpu.dot_dimension_numbers<[1], [0], [0], [1], [0, 0, 1, 1], [], []>} : vector<16x32xf32>, vector<32x96xf32>, vector<16x96xf32> -> vector<16x96xf32>
    %31 = vector.extract_strided_slice %30 {offsets = [0, 0], sizes = [16, 16], strides = [1, 1]} : vector<16x96xf32> to vector<16x16xf32>
    %32 = vector.extract_strided_slice %30 {offsets = [0, 32], sizes = [16, 16], strides = [1, 1]} : vector<16x96xf32> to vector<16x16xf32>
    %33 = vector.extract_strided_slice %30 {offsets = [0, 64], sizes = [16, 16], strides = [1, 1]} : vector<16x96xf32> to vector<16x16xf32>
    %cst_13 = arith.constant dense<0.000000e+00> : vector<16x16xf32>
    %34 = tpu.matmul %31, %32, %cst_13 {dimension_numbers = #tpu.dot_dimension_numbers<[1], [1], [0], [0], [0, 0, 1, 0], [], []>} : vector<16x16xf32>, vector<16x16xf32>, vector<16x16xf32> -> vector<16x16xf32>
    %cst_14 = arith.constant 2.500000e-01 : f32
    %35 = vector.broadcast %cst_14 : f32 to vector<16x16xf32>
    %36 = arith.mulf %34, %35 : vector<16x16xf32>
    %37 = arith.addf %36, %1 : vector<16x16xf32>
    %cst_15 = arith.constant dense<0xFF800000> : vector<16xf32>
    %38 = vector.multi_reduction <maximumf>, %37, %cst_15 [1] : vector<16x16xf32> to vector<16xf32>
    %39 = vector.shape_cast %38 : vector<16xf32> to vector<16x1xf32>
    %40 = vector.broadcast %39 : vector<16x1xf32> to vector<16x16xf32>
    %41 = arith.subf %37, %40 : vector<16x16xf32>
    %42 = math.exp %41 : vector<16x16xf32>
    %cst_16 = arith.constant dense<0.000000e+00> : vector<16xf32>
    %43 = vector.multi_reduction <add>, %42, %cst_16 [1] : vector<16x16xf32> to vector<16xf32>
    %44 = vector.shape_cast %43 : vector<16xf32> to vector<16x1xf32>
    %45 = tpu.reciprocal %44 {approx = true} : vector<16x1xf32> -> vector<16x1xf32>
    %46 = vector.broadcast %45 : vector<16x1xf32> to vector<16x16xf32>
    %47 = arith.mulf %42, %46 : vector<16x16xf32>
    %cst_17 = arith.constant dense<0.000000e+00> : vector<16x16xf32>
    %48 = tpu.matmul %47, %33, %cst_17 {dimension_numbers = #tpu.dot_dimension_numbers<[1], [0], [0], [1], [0, 0, 1, 1], [], []>} : vector<16x16xf32>, vector<16x16xf32>, vector<16x16xf32> -> vector<16x16xf32>
    %49 = vector.extract_strided_slice %30 {offsets = [0, 16], sizes = [16, 16], strides = [1, 1]} : vector<16x96xf32> to vector<16x16xf32>
    %50 = vector.extract_strided_slice %30 {offsets = [0, 48], sizes = [16, 16], strides = [1, 1]} : vector<16x96xf32> to vector<16x16xf32>
    %51 = vector.extract_strided_slice %30 {offsets = [0, 80], sizes = [16, 16], strides = [1, 1]} : vector<16x96xf32> to vector<16x16xf32>
    %cst_18 = arith.constant dense<0.000000e+00> : vector<16x16xf32>
    %52 = tpu.matmul %49, %50, %cst_18 {dimension_numbers = #tpu.dot_dimension_numbers<[1], [1], [0], [0], [0, 0, 1, 0], [], []>} : vector<16x16xf32>, vector<16x16xf32>, vector<16x16xf32> -> vector<16x16xf32>
    %cst_19 = arith.constant 2.500000e-01 : f32
    %53 = vector.broadcast %cst_19 : f32 to vector<16x16xf32>
    %54 = arith.mulf %52, %53 : vector<16x16xf32>
    %55 = arith.addf %54, %1 : vector<16x16xf32>
    %cst_20 = arith.constant dense<0xFF800000> : vector<16xf32>
    %56 = vector.multi_reduction <maximumf>, %55, %cst_20 [1] : vector<16x16xf32> to vector<16xf32>
    %57 = vector.shape_cast %56 : vector<16xf32> to vector<16x1xf32>
    %58 = vector.broadcast %57 : vector<16x1xf32> to vector<16x16xf32>
    %59 = arith.subf %55, %58 : vector<16x16xf32>
    %60 = math.exp %59 : vector<16x16xf32>
    %cst_21 = arith.constant dense<0.000000e+00> : vector<16xf32>
    %61 = vector.multi_reduction <add>, %60, %cst_21 [1] : vector<16x16xf32> to vector<16xf32>
    %62 = vector.shape_cast %61 : vector<16xf32> to vector<16x1xf32>
    %63 = tpu.reciprocal %62 {approx = true} : vector<16x1xf32> -> vector<16x1xf32>
    %64 = vector.broadcast %63 : vector<16x1xf32> to vector<16x16xf32>
    %65 = arith.mulf %60, %64 : vector<16x16xf32>
    %cst_22 = arith.constant dense<0.000000e+00> : vector<16x16xf32>
    %66 = tpu.matmul %65, %51, %cst_22 {dimension_numbers = #tpu.dot_dimension_numbers<[1], [0], [0], [1], [0, 0, 1, 1], [], []>} : vector<16x16xf32>, vector<16x16xf32>, vector<16x16xf32> -> vector<16x16xf32>
    %67 = tpu.concatenate %48, %66 in 1 : vector<16x16xf32>, vector<16x16xf32> -> vector<16x32xf32>
    %c18 = arith.constant 18 : index
    %c0_23 = arith.constant 0 : index
    %68 = vector.load %arg2[%c18, %c0_23] : memref<32x128xf32, #tpu.memory_space<vmem>>, vector<1x32xf32>
    %c0_24 = arith.constant 0 : index
    %c0_25 = arith.constant 0 : index
    %c128 = arith.constant 128 : index
    %69 = vector.load %arg1[%c0_24, %c0_25, %c128] : memref<2x64x512xf32, #tpu.memory_space<vmem>>, vector<1x32x32xf32>
    %70 = vector.shape_cast %69 : vector<1x32x32xf32> to vector<32x32xf32>
    %cst_26 = arith.constant dense<0.000000e+00> : vector<16x32xf32>
    %71 = tpu.matmul %67, %70, %cst_26 {dimension_numbers = #tpu.dot_dimension_numbers<[1], [0], [0], [1], [0, 0, 1, 1], [], []>} : vector<16x32xf32>, vector<32x32xf32>, vector<16x32xf32> -> vector<16x32xf32>
    %72 = vector.broadcast %68 : vector<1x32xf32> to vector<16x32xf32>
    %73 = arith.addf %71, %72 : vector<16x32xf32>
    %74 = arith.addf %0, %73 : vector<16x32xf32>
    %c19 = arith.constant 19 : index
    %c0_27 = arith.constant 0 : index
    %75 = vector.load %arg2[%c19, %c0_27] : memref<32x128xf32, #tpu.memory_space<vmem>>, vector<1x32xf32>
    %c20 = arith.constant 20 : index
    %c0_28 = arith.constant 0 : index
    %76 = vector.load %arg2[%c20, %c0_28] : memref<32x128xf32, #tpu.memory_space<vmem>>, vector<1x32xf32>
    %cst_29 = arith.constant dense<0.000000e+00> : vector<16xf32>
    %77 = vector.multi_reduction <add>, %74, %cst_29 [1] : vector<16x32xf32> to vector<16xf32>
    %78 = vector.shape_cast %77 : vector<16xf32> to vector<16x1xf32>
    %cst_30 = arith.constant 3.200000e+01 : f32
    %79 = vector.broadcast %cst_30 : f32 to vector<16x1xf32>
    %80 = arith.divf %78, %79 : vector<16x1xf32>
    %81 = vector.broadcast %80 : vector<16x1xf32> to vector<16x32xf32>
    %82 = arith.subf %74, %81 : vector<16x32xf32>
    %83 = vector.broadcast %80 : vector<16x1xf32> to vector<16x32xf32>
    %84 = arith.subf %74, %83 : vector<16x32xf32>
    %85 = arith.mulf %82, %84 : vector<16x32xf32>
    %cst_31 = arith.constant dense<0.000000e+00> : vector<16xf32>
    %86 = vector.multi_reduction <add>, %85, %cst_31 [1] : vector<16x32xf32> to vector<16xf32>
    %87 = vector.shape_cast %86 : vector<16xf32> to vector<16x1xf32>
    %cst_32 = arith.constant 3.200000e+01 : f32
    %88 = vector.broadcast %cst_32 : f32 to vector<16x1xf32>
    %89 = arith.divf %87, %88 : vector<16x1xf32>
    %90 = vector.broadcast %80 : vector<16x1xf32> to vector<16x32xf32>
    %91 = arith.subf %74, %90 : vector<16x32xf32>
    %cst_33 = arith.constant 9.99999974E-6 : f32
    %92 = vector.broadcast %cst_33 : f32 to vector<16x1xf32>
    %93 = arith.addf %89, %92 : vector<16x1xf32>
    %94 = math.rsqrt %93 : vector<16x1xf32>
    %95 = vector.broadcast %94 : vector<16x1xf32> to vector<16x32xf32>
    %96 = arith.mulf %91, %95 : vector<16x32xf32>
    %97 = vector.broadcast %75 : vector<1x32xf32> to vector<16x32xf32>
    %98 = arith.mulf %96, %97 : vector<16x32xf32>
    %99 = vector.broadcast %76 : vector<1x32xf32> to vector<16x32xf32>
    %100 = arith.addf %98, %99 : vector<16x32xf32>
    %c21 = arith.constant 21 : index
    %c0_34 = arith.constant 0 : index
    %101 = vector.load %arg2[%c21, %c0_34] : memref<32x128xf32, #tpu.memory_space<vmem>>, vector<1x64xf32>
    %c0_35 = arith.constant 0 : index
    %c0_36 = arith.constant 0 : index
    %c256 = arith.constant 256 : index
    %102 = vector.load %arg1[%c0_35, %c0_36, %c256] : memref<2x64x512xf32, #tpu.memory_space<vmem>>, vector<1x32x64xf32>
    %103 = vector.shape_cast %102 : vector<1x32x64xf32> to vector<32x64xf32>
    %cst_37 = arith.constant dense<0.000000e+00> : vector<16x64xf32>
    %104 = tpu.matmul %100, %103, %cst_37 {dimension_numbers = #tpu.dot_dimension_numbers<[1], [0], [0], [1], [0, 0, 1, 1], [], []>} : vector<16x32xf32>, vector<32x64xf32>, vector<16x64xf32> -> vector<16x64xf32>
    %105 = vector.broadcast %101 : vector<1x64xf32> to vector<16x64xf32>
    %106 = arith.addf %104, %105 : vector<16x64xf32>
    %cst_38 = arith.constant 5.000000e-01 : f32
    %107 = vector.broadcast %cst_38 : f32 to vector<16x64xf32>
    %108 = arith.mulf %107, %106 : vector<16x64xf32>
    %cst_39 = arith.constant 0.707106769 : f32
    %109 = vector.broadcast %cst_39 : f32 to vector<16x64xf32>
    %110 = arith.mulf %106, %109 : vector<16x64xf32>
    %111 = math.erf %110 : vector<16x64xf32>
    %cst_40 = arith.constant 1.000000e+00 : f32
    %112 = vector.broadcast %cst_40 : f32 to vector<16x64xf32>
    %113 = arith.addf %112, %111 : vector<16x64xf32>
    %114 = arith.mulf %108, %113 : vector<16x64xf32>
    %c22 = arith.constant 22 : index
    %c0_41 = arith.constant 0 : index
    %115 = vector.load %arg2[%c22, %c0_41] : memref<32x128xf32, #tpu.memory_space<vmem>>, vector<1x32xf32>
    %c0_42 = arith.constant 0 : index
    %c0_43 = arith.constant 0 : index
    %c384 = arith.constant 384 : index
    %116 = vector.load %arg1[%c0_42, %c0_43, %c384] : memref<2x64x512xf32, #tpu.memory_space<vmem>>, vector<1x64x32xf32>
    %117 = vector.shape_cast %116 : vector<1x64x32xf32> to vector<64x32xf32>
    %cst_44 = arith.constant dense<0.000000e+00> : vector<16x32xf32>
    %118 = tpu.matmul %114, %117, %cst_44 {dimension_numbers = #tpu.dot_dimension_numbers<[1], [0], [0], [1], [0, 0, 1, 1], [], []>} : vector<16x64xf32>, vector<64x32xf32>, vector<16x32xf32> -> vector<16x32xf32>
    %119 = vector.broadcast %115 : vector<1x32xf32> to vector<16x32xf32>
    %120 = arith.addf %118, %119 : vector<16x32xf32>
    %121 = arith.addf %74, %120 : vector<16x32xf32>
    %c24 = arith.constant 24 : index
    %c0_45 = arith.constant 0 : index
    %122 = vector.load %arg2[%c24, %c0_45] : memref<32x128xf32, #tpu.memory_space<vmem>>, vector<1x32xf32>
    %c25 = arith.constant 25 : index
    %c0_46 = arith.constant 0 : index
    %123 = vector.load %arg2[%c25, %c0_46] : memref<32x128xf32, #tpu.memory_space<vmem>>, vector<1x32xf32>
    %cst_47 = arith.constant dense<0.000000e+00> : vector<16xf32>
    %124 = vector.multi_reduction <add>, %121, %cst_47 [1] : vector<16x32xf32> to vector<16xf32>
    %125 = vector.shape_cast %124 : vector<16xf32> to vector<16x1xf32>
    %cst_48 = arith.constant 3.200000e+01 : f32
    %126 = vector.broadcast %cst_48 : f32 to vector<16x1xf32>
    %127 = arith.divf %125, %126 : vector<16x1xf32>
    %128 = vector.broadcast %127 : vector<16x1xf32> to vector<16x32xf32>
    %129 = arith.subf %121, %128 : vector<16x32xf32>
    %130 = vector.broadcast %127 : vector<16x1xf32> to vector<16x32xf32>
    %131 = arith.subf %121, %130 : vector<16x32xf32>
    %132 = arith.mulf %129, %131 : vector<16x32xf32>
    %cst_49 = arith.constant dense<0.000000e+00> : vector<16xf32>
    %133 = vector.multi_reduction <add>, %132, %cst_49 [1] : vector<16x32xf32> to vector<16xf32>
    %134 = vector.shape_cast %133 : vector<16xf32> to vector<16x1xf32>
    %cst_50 = arith.constant 3.200000e+01 : f32
    %135 = vector.broadcast %cst_50 : f32 to vector<16x1xf32>
    %136 = arith.divf %134, %135 : vector<16x1xf32>
    %137 = vector.broadcast %127 : vector<16x1xf32> to vector<16x32xf32>
    %138 = arith.subf %121, %137 : vector<16x32xf32>
    %cst_51 = arith.constant 9.99999974E-6 : f32
    %139 = vector.broadcast %cst_51 : f32 to vector<16x1xf32>
    %140 = arith.addf %136, %139 : vector<16x1xf32>
    %141 = math.rsqrt %140 : vector<16x1xf32>
    %142 = vector.broadcast %141 : vector<16x1xf32> to vector<16x32xf32>
    %143 = arith.mulf %138, %142 : vector<16x32xf32>
    %144 = vector.broadcast %122 : vector<1x32xf32> to vector<16x32xf32>
    %145 = arith.mulf %143, %144 : vector<16x32xf32>
    %146 = vector.broadcast %123 : vector<1x32xf32> to vector<16x32xf32>
    %147 = arith.addf %145, %146 : vector<16x32xf32>
    %c1 = arith.constant 1 : index
    %c0_52 = arith.constant 0 : index
    %c0_53 = arith.constant 0 : index
    %148 = vector.load %arg1[%c1, %c0_52, %c0_53] : memref<2x64x512xf32, #tpu.memory_space<vmem>>, vector<1x32x96xf32>
    %149 = vector.shape_cast %148 : vector<1x32x96xf32> to vector<32x96xf32>
    %cst_54 = arith.constant dense<0.000000e+00> : vector<16x96xf32>
    %150 = tpu.matmul %147, %149, %cst_54 {dimension_numbers = #tpu.dot_dimension_numbers<[1], [0], [0], [1], [0, 0, 1, 1], [], []>} : vector<16x32xf32>, vector<32x96xf32>, vector<16x96xf32> -> vector<16x96xf32>
    %151 = vector.extract_strided_slice %150 {offsets = [0, 0], sizes = [16, 16], strides = [1, 1]} : vector<16x96xf32> to vector<16x16xf32>
    %152 = vector.extract_strided_slice %150 {offsets = [0, 32], sizes = [16, 16], strides = [1, 1]} : vector<16x96xf32> to vector<16x16xf32>
    %153 = vector.extract_strided_slice %150 {offsets = [0, 64], sizes = [16, 16], strides = [1, 1]} : vector<16x96xf32> to vector<16x16xf32>
    %cst_55 = arith.constant dense<0.000000e+00> : vector<16x16xf32>
    %154 = tpu.matmul %151, %152, %cst_55 {dimension_numbers = #tpu.dot_dimension_numbers<[1], [1], [0], [0], [0, 0, 1, 0], [], []>} : vector<16x16xf32>, vector<16x16xf32>, vector<16x16xf32> -> vector<16x16xf32>
    %cst_56 = arith.constant 2.500000e-01 : f32
    %155 = vector.broadcast %cst_56 : f32 to vector<16x16xf32>
    %156 = arith.mulf %154, %155 : vector<16x16xf32>
    %157 = arith.addf %156, %1 : vector<16x16xf32>
    %cst_57 = arith.constant dense<0xFF800000> : vector<16xf32>
    %158 = vector.multi_reduction <maximumf>, %157, %cst_57 [1] : vector<16x16xf32> to vector<16xf32>
    %159 = vector.shape_cast %158 : vector<16xf32> to vector<16x1xf32>
    %160 = vector.broadcast %159 : vector<16x1xf32> to vector<16x16xf32>
    %161 = arith.subf %157, %160 : vector<16x16xf32>
    %162 = math.exp %161 : vector<16x16xf32>
    %cst_58 = arith.constant dense<0.000000e+00> : vector<16xf32>
    %163 = vector.multi_reduction <add>, %162, %cst_58 [1] : vector<16x16xf32> to vector<16xf32>
    %164 = vector.shape_cast %163 : vector<16xf32> to vector<16x1xf32>
    %165 = tpu.reciprocal %164 {approx = true} : vector<16x1xf32> -> vector<16x1xf32>
    %166 = vector.broadcast %165 : vector<16x1xf32> to vector<16x16xf32>
    %167 = arith.mulf %162, %166 : vector<16x16xf32>
    %cst_59 = arith.constant dense<0.000000e+00> : vector<16x16xf32>
    %168 = tpu.matmul %167, %153, %cst_59 {dimension_numbers = #tpu.dot_dimension_numbers<[1], [0], [0], [1], [0, 0, 1, 1], [], []>} : vector<16x16xf32>, vector<16x16xf32>, vector<16x16xf32> -> vector<16x16xf32>
    %169 = vector.extract_strided_slice %150 {offsets = [0, 16], sizes = [16, 16], strides = [1, 1]} : vector<16x96xf32> to vector<16x16xf32>
    %170 = vector.extract_strided_slice %150 {offsets = [0, 48], sizes = [16, 16], strides = [1, 1]} : vector<16x96xf32> to vector<16x16xf32>
    %171 = vector.extract_strided_slice %150 {offsets = [0, 80], sizes = [16, 16], strides = [1, 1]} : vector<16x96xf32> to vector<16x16xf32>
    %cst_60 = arith.constant dense<0.000000e+00> : vector<16x16xf32>
    %172 = tpu.matmul %169, %170, %cst_60 {dimension_numbers = #tpu.dot_dimension_numbers<[1], [1], [0], [0], [0, 0, 1, 0], [], []>} : vector<16x16xf32>, vector<16x16xf32>, vector<16x16xf32> -> vector<16x16xf32>
    %cst_61 = arith.constant 2.500000e-01 : f32
    %173 = vector.broadcast %cst_61 : f32 to vector<16x16xf32>
    %174 = arith.mulf %172, %173 : vector<16x16xf32>
    %175 = arith.addf %174, %1 : vector<16x16xf32>
    %cst_62 = arith.constant dense<0xFF800000> : vector<16xf32>
    %176 = vector.multi_reduction <maximumf>, %175, %cst_62 [1] : vector<16x16xf32> to vector<16xf32>
    %177 = vector.shape_cast %176 : vector<16xf32> to vector<16x1xf32>
    %178 = vector.broadcast %177 : vector<16x1xf32> to vector<16x16xf32>
    %179 = arith.subf %175, %178 : vector<16x16xf32>
    %180 = math.exp %179 : vector<16x16xf32>
    %cst_63 = arith.constant dense<0.000000e+00> : vector<16xf32>
    %181 = vector.multi_reduction <add>, %180, %cst_63 [1] : vector<16x16xf32> to vector<16xf32>
    %182 = vector.shape_cast %181 : vector<16xf32> to vector<16x1xf32>
    %183 = tpu.reciprocal %182 {approx = true} : vector<16x1xf32> -> vector<16x1xf32>
    %184 = vector.broadcast %183 : vector<16x1xf32> to vector<16x16xf32>
    %185 = arith.mulf %180, %184 : vector<16x16xf32>
    %cst_64 = arith.constant dense<0.000000e+00> : vector<16x16xf32>
    %186 = tpu.matmul %185, %171, %cst_64 {dimension_numbers = #tpu.dot_dimension_numbers<[1], [0], [0], [1], [0, 0, 1, 1], [], []>} : vector<16x16xf32>, vector<16x16xf32>, vector<16x16xf32> -> vector<16x16xf32>
    %187 = tpu.concatenate %168, %186 in 1 : vector<16x16xf32>, vector<16x16xf32> -> vector<16x32xf32>
    %c26 = arith.constant 26 : index
    %c0_65 = arith.constant 0 : index
    %188 = vector.load %arg2[%c26, %c0_65] : memref<32x128xf32, #tpu.memory_space<vmem>>, vector<1x32xf32>
    %c1_66 = arith.constant 1 : index
    %c0_67 = arith.constant 0 : index
    %c128_68 = arith.constant 128 : index
    %189 = vector.load %arg1[%c1_66, %c0_67, %c128_68] : memref<2x64x512xf32, #tpu.memory_space<vmem>>, vector<1x32x32xf32>
    %190 = vector.shape_cast %189 : vector<1x32x32xf32> to vector<32x32xf32>
    %cst_69 = arith.constant dense<0.000000e+00> : vector<16x32xf32>
    %191 = tpu.matmul %187, %190, %cst_69 {dimension_numbers = #tpu.dot_dimension_numbers<[1], [0], [0], [1], [0, 0, 1, 1], [], []>} : vector<16x32xf32>, vector<32x32xf32>, vector<16x32xf32> -> vector<16x32xf32>
    %192 = vector.broadcast %188 : vector<1x32xf32> to vector<16x32xf32>
    %193 = arith.addf %191, %192 : vector<16x32xf32>
    %194 = arith.addf %121, %193 : vector<16x32xf32>
    %c27 = arith.constant 27 : index
    %c0_70 = arith.constant 0 : index
    %195 = vector.load %arg2[%c27, %c0_70] : memref<32x128xf32, #tpu.memory_space<vmem>>, vector<1x32xf32>
    %c28 = arith.constant 28 : index
    %c0_71 = arith.constant 0 : index
    %196 = vector.load %arg2[%c28, %c0_71] : memref<32x128xf32, #tpu.memory_space<vmem>>, vector<1x32xf32>
    %cst_72 = arith.constant dense<0.000000e+00> : vector<16xf32>
    %197 = vector.multi_reduction <add>, %194, %cst_72 [1] : vector<16x32xf32> to vector<16xf32>
    %198 = vector.shape_cast %197 : vector<16xf32> to vector<16x1xf32>
    %cst_73 = arith.constant 3.200000e+01 : f32
    %199 = vector.broadcast %cst_73 : f32 to vector<16x1xf32>
    %200 = arith.divf %198, %199 : vector<16x1xf32>
    %201 = vector.broadcast %200 : vector<16x1xf32> to vector<16x32xf32>
    %202 = arith.subf %194, %201 : vector<16x32xf32>
    %203 = vector.broadcast %200 : vector<16x1xf32> to vector<16x32xf32>
    %204 = arith.subf %194, %203 : vector<16x32xf32>
    %205 = arith.mulf %202, %204 : vector<16x32xf32>
    %cst_74 = arith.constant dense<0.000000e+00> : vector<16xf32>
    %206 = vector.multi_reduction <add>, %205, %cst_74 [1] : vector<16x32xf32> to vector<16xf32>
    %207 = vector.shape_cast %206 : vector<16xf32> to vector<16x1xf32>
    %cst_75 = arith.constant 3.200000e+01 : f32
    %208 = vector.broadcast %cst_75 : f32 to vector<16x1xf32>
    %209 = arith.divf %207, %208 : vector<16x1xf32>
    %210 = vector.broadcast %200 : vector<16x1xf32> to vector<16x32xf32>
    %211 = arith.subf %194, %210 : vector<16x32xf32>
    %cst_76 = arith.constant 9.99999974E-6 : f32
    %212 = vector.broadcast %cst_76 : f32 to vector<16x1xf32>
    %213 = arith.addf %209, %212 : vector<16x1xf32>
    %214 = math.rsqrt %213 : vector<16x1xf32>
    %215 = vector.broadcast %214 : vector<16x1xf32> to vector<16x32xf32>
    %216 = arith.mulf %211, %215 : vector<16x32xf32>
    %217 = vector.broadcast %195 : vector<1x32xf32> to vector<16x32xf32>
    %218 = arith.mulf %216, %217 : vector<16x32xf32>
    %219 = vector.broadcast %196 : vector<1x32xf32> to vector<16x32xf32>
    %220 = arith.addf %218, %219 : vector<16x32xf32>
    %c29 = arith.constant 29 : index
    %c0_77 = arith.constant 0 : index
    %221 = vector.load %arg2[%c29, %c0_77] : memref<32x128xf32, #tpu.memory_space<vmem>>, vector<1x64xf32>
    %c1_78 = arith.constant 1 : index
    %c0_79 = arith.constant 0 : index
    %c256_80 = arith.constant 256 : index
    %222 = vector.load %arg1[%c1_78, %c0_79, %c256_80] : memref<2x64x512xf32, #tpu.memory_space<vmem>>, vector<1x32x64xf32>
    %223 = vector.shape_cast %222 : vector<1x32x64xf32> to vector<32x64xf32>
    %cst_81 = arith.constant dense<0.000000e+00> : vector<16x64xf32>
    %224 = tpu.matmul %220, %223, %cst_81 {dimension_numbers = #tpu.dot_dimension_numbers<[1], [0], [0], [1], [0, 0, 1, 1], [], []>} : vector<16x32xf32>, vector<32x64xf32>, vector<16x64xf32> -> vector<16x64xf32>
    %225 = vector.broadcast %221 : vector<1x64xf32> to vector<16x64xf32>
    %226 = arith.addf %224, %225 : vector<16x64xf32>
    %cst_82 = arith.constant 5.000000e-01 : f32
    %227 = vector.broadcast %cst_82 : f32 to vector<16x64xf32>
    %228 = arith.mulf %227, %226 : vector<16x64xf32>
    %cst_83 = arith.constant 0.707106769 : f32
    %229 = vector.broadcast %cst_83 : f32 to vector<16x64xf32>
    %230 = arith.mulf %226, %229 : vector<16x64xf32>
    %231 = math.erf %230 : vector<16x64xf32>
    %cst_84 = arith.constant 1.000000e+00 : f32
    %232 = vector.broadcast %cst_84 : f32 to vector<16x64xf32>
    %233 = arith.addf %232, %231 : vector<16x64xf32>
    %234 = arith.mulf %228, %233 : vector<16x64xf32>
    %c30 = arith.constant 30 : index
    %c0_85 = arith.constant 0 : index
    %235 = vector.load %arg2[%c30, %c0_85] : memref<32x128xf32, #tpu.memory_space<vmem>>, vector<1x32xf32>
    %c1_86 = arith.constant 1 : index
    %c0_87 = arith.constant 0 : index
    %c384_88 = arith.constant 384 : index
    %236 = vector.load %arg1[%c1_86, %c0_87, %c384_88] : memref<2x64x512xf32, #tpu.memory_space<vmem>>, vector<1x64x32xf32>
    %237 = vector.shape_cast %236 : vector<1x64x32xf32> to vector<64x32xf32>
    %cst_89 = arith.constant dense<0.000000e+00> : vector<16x32xf32>
    %238 = tpu.matmul %234, %237, %cst_89 {dimension_numbers = #tpu.dot_dimension_numbers<[1], [0], [0], [1], [0, 0, 1, 1], [], []>} : vector<16x64xf32>, vector<64x32xf32>, vector<16x32xf32> -> vector<16x32xf32>
    %239 = vector.broadcast %235 : vector<1x32xf32> to vector<16x32xf32>
    %240 = arith.addf %238, %239 : vector<16x32xf32>
    %241 = arith.addf %194, %240 : vector<16x32xf32>
    %c0_90 = arith.constant 0 : index
    %c0_91 = arith.constant 0 : index
    %242 = vector.load %arg3[%c0_90, %c0_91] : memref<16x32xf32, #tpu.memory_space<vmem>>, vector<16x32xf32>
    tpu.vector_store %arg3[%c0_90, %c0_91], %241 {strides = array<i32>} : memref<16x32xf32, #tpu.memory_space<vmem>>, vector<16x32xf32>,
    return
  }
}

</mosaic_0001>

<bundles_post_ra>
// kernel: _transformer_forward.1
= control target key start
LH: loop header
LB: loop body
LE: loop exit
PB: predicated region body
PF: predicated region fallthrough
CT: control target
= control target key end

     0   :  { %8 = vsyncpa [#allocation3], 0  ;;  %s2615_s0 = inlined_call_operand.vmem [shape: f32[16,32], index: 0, kind: input, shape index: {}, may-alias: {0,3}]   ;;  %s2616_s1 = inlined_call_operand.hbm [shape: f32[2,64,512], index: 1, kind: input, shape index: {}]   ;;  %s2617_s2 = inlined_call_operand.hbm [shape: f32[32,128], index: 2, kind: input, shape index: {}]   ;;  %s2618_s3 = inlined_call_operand.vmem [shape: f32[16,32], index: 3, kind: output, shape index: {}, may-alias: {0,3}]  }
   0x1   :  { %9 = vsyncpa [#allocation5], 0  ;;  %s2375_s12 = smov [#allocation2]   ;;  %s2327_s16 = scalar_lea.hbm %s2616_s1, 8192 }
   0x2   :  { %s17_s13 = sshll.u32 %s2375_s12, 4  ;;  %p2328_p0 = scmp.ne.s32.totalorder %s2616_s1, %s2327_s16  ;;  %s18_s13 = int_to_ptr.vmem [resolvable:$true] %s17_s13 }
   0x3   :  { %p2331_p1 = scmp.lt.u32.totalorder %s2327_s16, %s2616_s1 }
   0x5   :  { %p2333_p2 = pnand %p2331_p1, %p2328_p0 }
   0x7   :  { %2336 = shalt.err (!%p2333_p2)
}
   0x8   :  { %s2337_s21 = scalar_lea.vmem %s18_s13, 8192  ;;  %p2342_p4 = scmp.lt.s32.totalorder %s18_s13, %s18_s13 }
   0x9   :  { %p2338_p3 = scmp.ne.s32.totalorder %s18_s13, %s2337_s21  ;;  %p2343_p5 = scmp.lt.s32.totalorder %s2337_s21, %s2337_s21 }
   0xb   :  { %p2344_p6 = por %p2343_p5, %p2342_p4 }
   0xd   :  { %p2345_p7 = pnand %p2344_p6, %p2338_p3 }
   0xf   :  { %2348 = shalt.err (!%p2345_p7)
}
  0x10   :  { %s2376_s22 = smov 512   ;;  %s2377_s23 = smov 32  }
  0x11   :  { %23 = dma.hbm_to_vmem [thread:$0]  %s2616_s1, 8192, %s18_s13, [#allocation3], %s2376_s22, %s2376_s22, %s2377_s23  }
  0x12   :  { %s2378_s26 = smov [#allocation4]   ;;  %s2349_s30 = scalar_lea.hbm %s2617_s2, 512 }
  0x13   :  { %s29_s27 = sshll.u32 %s2378_s26, 4  ;;  %p2350_p8 = scmp.ne.s32.totalorder %s2617_s2, %s2349_s30  ;;  %s30_s27 = int_to_ptr.vmem [resolvable:$true] %s29_s27 }
  0x14   :  { %p2353_p9 = scmp.lt.u32.totalorder %s2349_s30, %s2617_s2 }
  0x16   :  { %p2355_p10 = pnand %p2353_p9, %p2350_p8 }
  0x18   :  { %2358 = shalt.err (!%p2355_p10)
}
  0x19   :  { %s2359_s8 = scalar_lea.vmem %s30_s27, 512  ;;  %p2364_p12 = scmp.lt.s32.totalorder %s30_s27, %s30_s27 }
  0x1a   :  { %p2360_p11 = scmp.ne.s32.totalorder %s30_s27, %s2359_s8  ;;  %p2365_p13 = scmp.lt.s32.totalorder %s2359_s8, %s2359_s8 }
  0x1c   :  { %p2366_p0 = por %p2365_p13, %p2364_p12 }
  0x1e   :  { %p2367_p1 = pnand %p2366_p0, %p2360_p11 }
  0x20   :  { %2370 = shalt.err (!%p2367_p1)
}
  0x21   :  { %s2379_s1 = smov 128   ;;  %s2380_s9 = smov 8  }
  0x22   :  { %35 = dma.hbm_to_vmem [thread:$0]  %s2617_s2, 512, %s30_s27, [#allocation5], %s2379_s1, %s2379_s1, %s2380_s9  }
  0x23   :  { %2371 = dma.done.wait [#allocation3], 8192  }
  0x24   :  { %2372 = vsyncadd [#allocation3], 4294959104 }
  0x25   :  { %2373 = dma.done.wait [#allocation5], 512  }
  0x26   :  { %2374 = vsyncadd [#allocation5], 4294966784  ;;  %vm48_vm0 = vcmask 261120   ;;  %v2434_v0 = vld [vmem:[%s2615_s0] sm:$0xff]  ;;  %v2439_v1 = vld [vmem:[%s2615_s0 + $0x8] sm:$0xff]  ;;  %vm179_vm1 = vcmask 130048  }
  0x27   :  { %v49_v2 = vsel %vm48_vm0, %v2434_v0, 0.0  ;;  %v52_v3 = vsel %vm48_vm0, %v2439_v1, 0.0  ;;  %v88_v14 = vld [vmem:[#allocation2] sm:$0xff]  ;;  %v1797_v27 = vld [vmem:[#allocation4 + $0x10] ss:$0 sm:$0xff]  ;;  %s2381_s0 = smov 80   ;;  %vm2462_vm2 = vmpackc.low %vm179_vm1, %vm179_vm1 }
  0x28   :  { %50 = vadd.xlane.f32.xlu0 %v49_v2  ;;  %v89_v15 = vld [vmem:[#allocation2 + $0x20] sm:$0xff]  ;;  %v1798_v29 = vld [vmem:[#allocation4 + $0x11] ss:$0 sm:$0xff]  ;;  %s2382_s2 = smov 96   ;;  %s2383_s16 = smov 112   ;;  %v2477_v51 = vld [vmem:[#allocation4 + $0x8] sm:$0xff] }
  0x29   :  { %v90_v16 = vld [vmem:[#allocation2 + $0x40] sm:$0xff]  ;;  %v2099_v17 = vpack.c.bf16 %v89_v15, %v88_v14  ;;  %s2384_s17 = smov 48   ;;  %s2385_s18 = smov 64   ;;  %vm835_vm3 = vcmask 523264  }
  0x2a   :  { %v91_v18 = vld [vmem:[#allocation2 + $0x60] sm:$0xff]  ;;  %s2386_s19 = smov 16  }
  0x2b   :  { %v2103_v19 = vpack.c.bf16 %v91_v18, %v90_v16  ;;  %2100 = vmatprep.subr.bf16.mxu1 %v2099_v17  ;;  %v2479_v54 = vld [vmem:[#allocation4] sm:$0xff] }
  0x2c   :  { %53 = vadd.xlane.f32.xlu0 %v52_v3  ;;  %2102 = vmatpush3.bf16.msra.mxu1 %v2099_v17 }
  0x2d   :  { %2104 = vmatprep.subr.bf16.mxu1 %v2103_v19 }
  0x30   :  { %2106 = vmatpush3.bf16.msra.mxu1 %v2103_v19 }
  0xb5   :  { %v51_v4 = vpop.xlane.xlu0 %50 }
  0xb6   :  { %v56_v5 = vmul.f32 0.03125, %v51_v4 }
  0xb8   :  { %v58_v6 = vsub.f32 %v2434_v0, %v56_v5 }
  0xb9   :  { %v54_v7 = vpop.xlane.xlu0 %53 }
  0xba   :  { %v57_v8 = vmul.f32 0.03125, %v54_v7  ;;  %v60_v9 = vmul.f32 %v58_v6, %v58_v6 }
  0xbc   :  { %v59_v10 = vsub.f32 %v2439_v1, %v57_v8  ;;  %v62_v11 = vsel %vm48_vm0, %v60_v9, 0.0 }
  0xbd   :  { %63 = vadd.xlane.f32.xlu1 %v62_v11 }
  0xbe   :  { %v61_v12 = vmul.f32 %v59_v10, %v59_v10 }
  0xc0   :  { %v65_v13 = vsel %vm48_vm0, %v61_v12, 0.0 }
  0xc1   :  { %66 = vadd.xlane.f32.xlu1 %v65_v13 }
 0x14a   :  { %v64_v20 = vpop.xlane.xlu1 %63 }
 0x14b   :  { %v68_v21 = vmul.f32 0.03125, %v64_v20 }
 0x14d   :  { %v70_v22 = vadd.f32 1e-05, %v68_v21 }
 0x14e   :  { %v67_v23 = vpop.xlane.xlu1 %66 }
 0x14f   :  { %2271 = vrsqrt.f32 %v70_v22  ;;  %v69_v24 = vmul.f32 0.03125, %v67_v23 }
 0x151   :  { %v71_v25 = vadd.f32 1e-05, %v69_v24 }
 0x153   :  { %2273 = vrsqrt.f32 %v71_v25 }
 0x159   :  { %v2272_v26 = vpop.eup %2271 }
 0x15a   :  { %v74_v28 = vmul.f32 %v2272_v26, %v58_v6 }
 0x15c   :  { %v80_v30 = vmul.f32 %v1797_v27, %v74_v28 }
 0x15d   :  { %v2274_v31 = vpop.eup %2273 }
 0x15e   :  { %v75_v32 = vmul.f32 %v2274_v31, %v59_v10  ;;  %v86_v33 = vadd.f32 %v1798_v29, %v80_v30 }
 0x160   :  { %v81_v34 = vmul.f32 %v1797_v27, %v75_v32  ;;  %1947 = vmatprep.mubr.msk.f32.mxu1 %vm48_vm0, %v86_v33 }
 0x162   :  { %v87_v35 = vadd.f32 %v1798_v29, %v81_v34 }
 0x164   :  { %1948 = vmatmul.mubr.msk.f32.vlgmr.msra.gmra.mrb[0].mxu1 %vm48_vm0, %v87_v35 }
 0x237   :  { %v1949_v36 = vpop.f32.mrb[0].mxu1 }
 0x238   :  { %v164_v37 = vpop.f32.mrb[1].mxu1 }
 0x239   :  { %1954 = vmatprep.mubr.msk.f32.mxu1 %vm179_vm1, %v164_v37  ;;  %v2452_v38 = vpack.i.bf16 %v1949_v36, %v164_v37 }
 0x23b   :  { %2237 = vrot.lane.b32.xlu1 %v2452_v38, %s2381_s0  ;;  %2232 = vrot.lane.b32.xlu0 %v2452_v38, %s2382_s2 }
 0x23f   :  { %376 = vrot.lane.b32.xlu1 %v164_v37, %s2383_s16 }
 0x243   :  { %378 = vrot.lane.b32.xlu1 %v1949_v36, %s2383_s16 }
 0x2ad   :  { %v2238_v39 = vpop.permute.xlu1 %2237  ;;  %v2233_v40 = vpop.permute.xlu0 %2232 }
 0x2ae   :  { %v2240_v41 = vunpack.i.h.bf16 %v2238_v39  ;;  %v2239_v42 = vunpack.i.l.bf16 %v2238_v39  ;;  %v2235_v43 = vunpack.i.h.bf16 %v2233_v40  ;;  %v2234_v44 = vunpack.i.l.bf16 %v2233_v40 }
 0x2b0   :  { %v2107_v46 = vpack.c.bf16 %v2235_v43, %v2234_v44  ;;  %v2117_v47 = vpack.c.bf16 %v2240_v41, %v2239_v42 }
 0x2b1   :  { %v377_v48 = vpop.permute.xlu1 %376 }
 0x2b2   :  { %2109 = vmatprep.subr.msk.bf16.mxu1 %vm2462_vm2, %v2107_v46 }
 0x2b3   :  { %2112 = vmatpush3.bf16.xpose.msk.msra.mxu1 %vm2462_vm2, %v2107_v46 }
 0x2b4   :  { %2119 = vmatprep.subr.msk.bf16.mxu1 %vm2462_vm2, %v2117_v47 }
 0x2b5   :  { %v379_v49 = vpop.permute.xlu1 %378 }
 0x2ba   :  { %1955 = vmatmul.mubr.msk.f32.vlgmr.msra.gmra.mrb[2].mxu1 %vm179_vm1, %v1949_v36 }
 0x2bb   :  { %2122 = vmatpush3.bf16.xpose.msk.msra.mxu1 %vm2462_vm2, %v2117_v47  ;;  %1968 = vmatprep.mubr.msk.f32.mxu1 %vm179_vm1, %v377_v48  ;;  %v591_v47 = vld [vmem:[#allocation2 + $0x8] sm:$0xff] }
 0x2bc   :  { %v592_v48 = vld [vmem:[#allocation2 + $0x28] sm:$0xff] }
 0x2c2   :  { %1969 = vmatmul.mubr.msk.f32.vlgmr.msra.gmra.mrb[4].mxu1 %vm179_vm1, %v379_v49  ;;  %v2127_v49 = vpack.c.bf16 %v592_v48, %v591_v47  ;;  %v827_v47 = vld [vmem:[#allocation2 + $0x98] sm:$0xff] }
 0x2c3   :  { %v828_v48 = vld [vmem:[#allocation2 + $0xb8] sm:$0xff] }
 0x38d   :  { %v1956_v50 = vpop.f32.mrb[2].mxu1 }
 0x38e   :  { %v264_v52 = vmul.f32 0.25, %v1956_v50  ;;  %v254_v53 = vpop.f32.mrb[3].mxu1  ;;  %v593_v50 = vld [vmem:[#allocation2 + $0x48] sm:$0xff] }
 0x38f   :  { %v263_v55 = vmul.f32 0.25, %v254_v53 }
 0x390   :  { %v266_v56 = vadd.f32 %v264_v52, %v2477_v51  ;;  %v594_v52 = vld [vmem:[#allocation2 + $0x68] sm:$0xff] }
 0x391   :  { %v265_v57 = vadd.f32 %v263_v55, %v2479_v54  ;;  %v2131_v53 = vpack.c.bf16 %v594_v52, %v593_v50  ;;  %v829_v50 = vld [vmem:[#allocation2 + $0xd8] sm:$0xff] }
 0x392   :  { %v270_v58 = vsel %vm179_vm1, %v266_v56, -inf  ;;  %v830_v52 = vld [vmem:[#allocation2 + $0xf8] sm:$0xff] }
 0x393   :  { %271 = vmax.xlane.f32.xlu1 %v270_v58  ;;  %v267_v59 = vsel %vm179_vm1, %v265_v57, -inf }
 0x394   :  { %268 = vmax.xlane.f32.xlu0 %v267_v59 }
 0x395   :  { %v1970_v60 = vpop.f32.mrb[4].mxu1 }
 0x396   :  { %v458_v61 = vpop.f32.mrb[5].mxu1  ;;  %v468_v62 = vmul.f32 0.25, %v1970_v60 }
 0x397   :  { %v467_v63 = vmul.f32 0.25, %v458_v61 }
 0x398   :  { %v470_v4 = vadd.f32 %v468_v62, %v2477_v51 }
 0x399   :  { %v469_v2 = vadd.f32 %v467_v63, %v2479_v54  ;;  %v1813_v63 = vld [vmem:[#allocation4 + $0x12] ss:$0 sm:$0xff] }
 0x39a   :  { %v474_v5 = vsel %vm179_vm1, %v470_v4, -inf }
 0x39b   :  { %v471_v3 = vsel %vm179_vm1, %v469_v2, -inf }
 0x39c   :  { %472 = vmax.xlane.f32.xlu0 %v471_v3 }
 0x3a0   :  { %475 = vmax.xlane.f32.xlu0 %v474_v5 }
 0x420   :  { %v272_v6 = vpop.xlane.xlu1 %271 }
 0x421   :  { %v274_v7 = vsub.f32 %v266_v56, %v272_v6  ;;  %v269_v8 = vpop.xlane.xlu0 %268 }
 0x422   :  { %v273_v9 = vsub.f32 %v265_v57, %v269_v8 }
 0x423   :  { %v277_v10 = vmul.f32 1.442695, %v274_v7 }
 0x424   :  { %v275_v11 = vmul.f32 1.442695, %v273_v9 }
 0x425   :  { %2275 = vpow2.f32 %v277_v10 }
 0x426   :  { %2277 = vpow2.f32 %v275_v11 }
 0x429   :  { %v473_v12 = vpop.xlane.xlu0 %472 }
 0x42a   :  { %v477_v13 = vsub.f32 %v469_v2, %v473_v12 }
 0x42c   :  { %v479_v14 = vmul.f32 1.442695, %v477_v13 }
 0x42d   :  { %v476_v15 = vpop.xlane.xlu0 %475 }
 0x42e   :  { %2279 = vpow2.f32 %v479_v14  ;;  %v478_v16 = vsub.f32 %v470_v4, %v476_v15 }
 0x42f   :  { %v2276_v17 = vpop.eup %2275 }
 0x430   :  { %v2278_v18 = vpop.eup %2277  ;;  %v481_v19 = vmul.f32 1.442695, %v478_v16  ;;  %v282_v20 = vsel %vm179_vm1, %v2276_v17, 0.0 }
 0x431   :  { %283 = vadd.xlane.f32.xlu1 %v282_v20  ;;  %v279_v21 = vsel %vm179_vm1, %v2278_v18, 0.0 }
 0x432   :  { %2281 = vpow2.f32 %v481_v19  ;;  %280 = vadd.xlane.f32.xlu0 %v279_v21  ;;  %v724_v19 = vld [vmem:[#allocation2 + $0x30] sm:$0xff] }
 0x433   :  { %v725_v21 = vld [vmem:[#allocation2 + $0x50] sm:$0xff] }
 0x438   :  { %v2280_v22 = vpop.eup %2279 }
 0x439   :  { %v483_v23 = vsel %vm179_vm1, %v2280_v22, 0.0 }
 0x43a   :  { %484 = vadd.xlane.f32.xlu0 %v483_v23 }
 0x43c   :  { %v2282_v24 = vpop.eup %2281 }
 0x43d   :  { %v486_v25 = vsel %vm179_vm1, %v2282_v24, 0.0 }
 0x43e   :  { %487 = vadd.xlane.f32.xlu1 %v486_v25 }
 0x44f   :  { %2247 = vrot.lane.b32.xlu1 %v2452_v38, %s2384_s17 }
 0x450   :  { %2242 = vrot.lane.b32.xlu0 %v2452_v38, %s2385_s18 }
 0x4be   :  { %v284_v27 = vpop.xlane.xlu1 %283 }
 0x4bf   :  { %v281_v26 = vpop.xlane.xlu0 %280 }
 0x4c0   :  { %2283 = vrcp.f32 %v281_v26 }
 0x4c1   :  { %2285 = vrcp.f32 %v284_v27 }
 0x4c7   :  { %v485_v28 = vpop.xlane.xlu0 %484 }
 0x4c8   :  { %2287 = vrcp.f32 %v485_v28 }
 0x4ca   :  { %v2284_v29 = vpop.eup %2283 }
 0x4cb   :  { %v488_v30 = vpop.xlane.xlu1 %487  ;;  %v2243_v31 = vpop.permute.xlu0 %2242  ;;  %v287_v32 = vmul.f32 %v2284_v29, %v2278_v18  ;;  %v723_v18 = vld [vmem:[#allocation2 + $0x10] sm:$0xff] }
 0x4cc   :  { %2289 = vrcp.f32 %v488_v30  ;;  %v2245_v33 = vunpack.i.h.bf16 %v2243_v31  ;;  %v2244_v34 = vunpack.i.l.bf16 %v2243_v31  ;;  %v2286_v36 = vpop.eup %2285  ;;  %v2135_v20 = vpack.c.bf16 %v724_v19, %v723_v18  ;;  %v1816_v31 = vld [vmem:[#allocation4 + $0x13] ss:$0 sm:$0xff] }
 0x4cd   :  { %1961 = vmatprep.mubr.msk.f32.mxu0 %vm179_vm1, %v287_v32  ;;  %v288_v42 = vmul.f32 %v2286_v36, %v2276_v17 }
 0x4ce   :  { %v2113_v35 = vpack.c.bf16 %v2245_v33, %v2244_v34  ;;  %2136 = vmatprep.subr.bf16.mxu1 %v2135_v20  ;;  %v1817_v33 = vld [vmem:[#allocation4 + $0x14] ss:$0 sm:$0xff] }
 0x4cf   :  { %v2248_v37 = vpop.permute.xlu1 %2247  ;;  %2138 = vmatpush3.bf16.msra.mxu1 %v2135_v20 }
 0x4d0   :  { %v2250_v39 = vunpack.i.h.bf16 %v2248_v37  ;;  %v2249_v38 = vunpack.i.l.bf16 %v2248_v37  ;;  %2114 = vmatprep.subr.bf16.mxu0 %v2113_v35 }
 0x4d1   :  { %2116 = vmatpush3.bf16.msra.mxu0 %v2113_v35 }
 0x4d2   :  { %v2288_v40 = vpop.eup %2287  ;;  %v2123_v41 = vpack.c.bf16 %v2250_v39, %v2249_v38 }
 0x4d3   :  { %v491_v43 = vmul.f32 %v2288_v40, %v2280_v22  ;;  %v726_v22 = vld [vmem:[#allocation2 + $0x70] sm:$0xff]  ;;  %v823_v40 = vld [vmem:[#allocation2 + $0x18] sm:$0xff] }
 0x4d4   :  { %1962 = vmatmul.mubr.msk.f32.vlgmr.msra.gmra.mrb[0].mxu0 %vm179_vm1, %v288_v42  ;;  %2124 = vmatprep.subr.bf16.mxu0 %v2123_v41  ;;  %v2139_v23 = vpack.c.bf16 %v726_v22, %v725_v21 }
 0x4d5   :  { %2126 = vmatpush3.bf16.msra.mxu0 %v2123_v41  ;;  %1975 = vmatprep.mubr.msk.f32.mxu0 %vm179_vm1, %v491_v43  ;;  %v824_v41 = vld [vmem:[#allocation2 + $0x38] sm:$0xff] }
 0x4d6   :  { %v2290_v44 = vpop.eup %2289  ;;  %2128 = vmatprep.subr.bf16.mxu0 %v2127_v49  ;;  %2140 = vmatprep.subr.bf16.mxu1 %v2139_v23  ;;  %v2143_v42 = vpack.c.bf16 %v824_v41, %v823_v40  ;;  %v825_v43 = vld [vmem:[#allocation2 + $0x58] sm:$0xff] }
 0x4d7   :  { %v492_v46 = vmul.f32 %v2290_v44, %v2282_v24  ;;  %2142 = vmatpush3.bf16.msra.mxu1 %v2139_v23  ;;  %v826_v44 = vld [vmem:[#allocation2 + $0x78] sm:$0xff] }
 0x4d9   :  { %1976 = vmatmul.mubr.msk.f32.vlgmr.msra.gmra.mrb[2].mxu0 %vm179_vm1, %v492_v46  ;;  %v2147_v46 = vpack.c.bf16 %v826_v44, %v825_v43 }
 0x4da   :  { %2130 = vmatpush3.bf16.msra.mxu0 %v2127_v49  ;;  %v2151_v49 = vpack.c.bf16 %v828_v48, %v827_v47 }
 0x4db   :  { %2132 = vmatprep.subr.bf16.mxu0 %v2131_v53 }
 0x4de   :  { %2134 = vmatpush3.bf16.msra.mxu0 %v2131_v53  ;;  %v2155_v53 = vpack.c.bf16 %v830_v52, %v829_v50 }
 0x4df   :  { %2144 = vmatprep.subr.bf16.mxu0 %v2143_v42 }
 0x5a7   :  { %v1963_v55 = vpop.f32.mrb[0].mxu0 }
 0x5a8   :  { %v367_v56 = vpop.f32.mrb[1].mxu0 }
 0x5ac   :  { %v1977_v57 = vpop.f32.mrb[2].mxu0 }
 0x5ad   :  { %v571_v58 = vpop.f32.mrb[3].mxu0 }
 0x5ae   :  { %582 = vrot.lane.b32.xlu1 %v571_v58, %s2386_s19 }
 0x5b2   :  { %584 = vrot.lane.b32.xlu1 %v1977_v57, %s2386_s19 }
 0x620   :  { %v583_v59 = vpop.permute.xlu1 %582 }
 0x621   :  { %v588_v60 = vsel %vm179_vm1, %v367_v56, %v583_v59 }
 0x622   :  { %1986 = vmatprep.mubr.msk.f32.mxu0 %vm48_vm0, %v588_v60 }
 0x624   :  { %v585_v61 = vpop.permute.xlu1 %584 }
 0x625   :  { %v589_v62 = vsel %vm179_vm1, %v1963_v55, %v585_v61  ;;  %v1818_v55 = vld [vmem:[#allocation4 + $0x15] ss:$0 sm:$0xff] }
 0x626   :  { %1987 = vmatmul.mubr.msk.f32.vlgmr.msra.gmra.mrb[4].mxu0 %vm48_vm0, %v589_v62 }
 0x627   :  { %2146 = vmatpush3.bf16.msra.mxu0 %v2143_v42  ;;  %v1825_v42 = vld [vmem:[#allocation4 + $0x19] ss:$0 sm:$0xff] }
 0x628   :  { %2148 = vmatprep.subr.bf16.mxu0 %v2147_v46 }
 0x62b   :  { %2150 = vmatpush3.bf16.msra.mxu0 %v2147_v46 }
 0x62c   :  { %2152 = vmatprep.subr.bf16.mxu0 %v2151_v49 }
 0x62f   :  { %2154 = vmatpush3.bf16.msra.mxu0 %v2151_v49 }
 0x630   :  { %2156 = vmatprep.subr.bf16.mxu0 %v2155_v53 }
 0x633   :  { %2158 = vmatpush3.bf16.msra.mxu0 %v2155_v53 }
 0x6f9   :  { %v1988_v2 = vpop.f32.mrb[4].mxu0 }
 0x6fa   :  { %v677_v3 = vadd.f32 %v1988_v2, %v1813_v63  ;;  %v671_v4 = vpop.f32.mrb[5].mxu0 }
 0x6fb   :  { %v672_v5 = vadd.f32 %v1813_v63, %v671_v4 }
 0x6fc   :  { %v2508_v6 = vadd.f32 %v677_v3, %v2439_v1 }
 0x6fd   :  { %v2511_v7 = vadd.f32 %v672_v5, %v2434_v0 }
 0x6fe   :  { %v687_v8 = vsel %vm48_vm0, %v2508_v6, 0.0 }
 0x6ff   :  { %688 = vadd.xlane.f32.xlu1 %v687_v8  ;;  %v684_v9 = vsel %vm48_vm0, %v2511_v7, 0.0 }
 0x700   :  { %685 = vadd.xlane.f32.xlu0 %v684_v9 }
 0x78c   :  { %v689_v10 = vpop.xlane.xlu1 %688 }
 0x78d   :  { %v691_v11 = vmul.f32 0.03125, %v689_v10  ;;  %v686_v12 = vpop.xlane.xlu0 %685  ;;  %v1821_v10 = vld [vmem:[#allocation4 + $0x16] ss:$0 sm:$0xff] }
 0x78e   :  { %v690_v13 = vmul.f32 0.03125, %v686_v12 }
 0x78f   :  { %v693_v14 = vsub.f32 %v2508_v6, %v691_v11 }
 0x790   :  { %v692_v1 = vsub.f32 %v2511_v7, %v690_v13 }
 0x791   :  { %v695_v16 = vmul.f32 %v693_v14, %v693_v14 }
 0x792   :  { %v694_v15 = vmul.f32 %v692_v1, %v692_v1 }
 0x793   :  { %v699_v17 = vsel %vm48_vm0, %v695_v16, 0.0 }
 0x794   :  { %v696_v0 = vsel %vm48_vm0, %v694_v15, 0.0 }
 0x795   :  { %697 = vadd.xlane.f32.xlu0 %v696_v0 }
 0x799   :  { %700 = vadd.xlane.f32.xlu0 %v699_v17 }
 0x822   :  { %v698_v24 = vpop.xlane.xlu0 %697 }
 0x823   :  { %v702_v25 = vmul.f32 0.03125, %v698_v24 }
 0x825   :  { %v704_v26 = vadd.f32 1e-05, %v702_v25  ;;  %v960_v25 = vld [vmem:[#allocation2 + $0x100] sm:$0xff] }
 0x826   :  { %v701_v27 = vpop.xlane.xlu0 %700 }
 0x827   :  { %2291 = vrsqrt.f32 %v704_v26  ;;  %v703_v28 = vmul.f32 0.03125, %v701_v27  ;;  %v961_v26 = vld [vmem:[#allocation2 + $0x120] sm:$0xff] }
 0x828   :  { %v2159_v27 = vpack.c.bf16 %v961_v26, %v960_v25 }
 0x829   :  { %v705_v29 = vadd.f32 1e-05, %v703_v28  ;;  %v962_v28 = vld [vmem:[#allocation2 + $0x140] sm:$0xff] }
 0x82a   :  { %2160 = vmatprep.subr.bf16.mxu1 %v2159_v27 }
 0x82b   :  { %2293 = vrsqrt.f32 %v705_v29  ;;  %v963_v29 = vld [vmem:[#allocation2 + $0x160] sm:$0xff] }
 0x831   :  { %v2292_v30 = vpop.eup %2291 }
 0x832   :  { %v708_v32 = vmul.f32 %v2292_v30, %v692_v1  ;;  %v2163_v30 = vpack.c.bf16 %v963_v29, %v962_v28 }
 0x834   :  { %v714_v34 = vmul.f32 %v1816_v31, %v708_v32 }
 0x835   :  { %v2294_v35 = vpop.eup %2293 }
 0x836   :  { %v709_v36 = vmul.f32 %v2294_v35, %v693_v14  ;;  %v720_v37 = vadd.f32 %v1817_v33, %v714_v34 }
 0x838   :  { %v715_v39 = vmul.f32 %v1816_v31, %v709_v36  ;;  %1997 = vmatprep.mubr.msk.f32.mxu1 %vm48_vm0, %v720_v37 }
 0x83a   :  { %v721_v38 = vadd.f32 %v1817_v33, %v715_v39  ;;  %v1824_v39 = vld [vmem:[#allocation4 + $0x18] ss:$0 sm:$0xff] }
 0x83c   :  { %1998 = vmatmul.mubr.msk.f32.vlgmr.msra.gmra.mrb[6].mxu1 %vm48_vm0, %v721_v38 }
 0x83d   :  { %2162 = vmatpush3.bf16.msra.mxu1 %v2159_v27 }
 0x83e   :  { %2164 = vmatprep.subr.bf16.mxu1 %v2163_v30 }
 0x841   :  { %2166 = vmatpush3.bf16.msra.mxu1 %v2163_v30 }
 0x90f   :  { %v1999_v56 = vpop.f32.mrb[6].mxu1 }
 0x910   :  { %v809_v57 = vadd.f32 %v1999_v56, %v1818_v55  ;;  %v803_v58 = vpop.f32.mrb[7].mxu1 }
 0x911   :  { %v804_v59 = vadd.f32 %v1818_v55, %v803_v58 }
 0x912   :  { %v815_v60 = vmul.f32 0.70710677, %v809_v57  ;;  %v813_v5 = vmul.f32 0.5, %v809_v57 }
 0x913   :  { %v814_v61 = vmul.f32 0.70710677, %v804_v59  ;;  %v812_v3 = vmul.f32 0.5, %v804_v59 }
 0x914   :  { %2295 = verf.f32 %v815_v60 }
 0x915   :  { %2297 = verf.f32 %v814_v61 }
 0x91e   :  { %v2296_v62 = vpop.eup %2295 }
 0x91f   :  { %v2298_v63 = vpop.eup %2297  ;;  %v819_v2 = vadd.f32 1.0, %v2296_v62 }
 0x920   :  { %v818_v4 = vadd.f32 1.0, %v2298_v63 }
 0x921   :  { %v821_v9 = vmul.f32 %v819_v2, %v813_v5 }
 0x922   :  { %v820_v8 = vmul.f32 %v818_v4, %v812_v3 }
 0x924   :  { %2016 = vmatprep.mubr.msk.f32.mxu0 %vm835_vm3, %v820_v8 }
 0x925   :  { %2017 = vmatmul.mubr.msk.f32.vlgmr.msra.gmra.mrb[6].mxu0 %vm835_vm3, %v821_v9 }
 0x9f8   :  { %v2018_v11 = vpop.f32.mrb[6].mxu0 }
 0x9f9   :  { %v914_v12 = vadd.f32 %v2018_v11, %v1821_v10  ;;  %v908_v13 = vpop.f32.mrb[7].mxu0 }
 0x9fa   :  { %v909_v14 = vadd.f32 %v1821_v10, %v908_v13 }
 0x9fb   :  { %v2526_v1 = vadd.f32 %v914_v12, %v2508_v6 }
 0x9fc   :  { %v2529_v15 = vadd.f32 %v909_v14, %v2511_v7 }
 0x9fd   :  { %v924_v0 = vsel %vm48_vm0, %v2526_v1, 0.0 }
 0x9fe   :  { %925 = vadd.xlane.f32.xlu1 %v924_v0  ;;  %v921_v16 = vsel %vm48_vm0, %v2529_v15, 0.0 }
 0x9ff   :  { %922 = vadd.xlane.f32.xlu0 %v921_v16 }
 0xa8b   :  { %v926_v17 = vpop.xlane.xlu1 %925 }
 0xa8c   :  { %v928_v18 = vmul.f32 0.03125, %v926_v17  ;;  %v923_v19 = vpop.xlane.xlu0 %922 }
 0xa8d   :  { %v927_v20 = vmul.f32 0.03125, %v923_v19 }
 0xa8e   :  { %v930_v21 = vsub.f32 %v2526_v1, %v928_v18 }
 0xa8f   :  { %v929_v6 = vsub.f32 %v2529_v15, %v927_v20 }
 0xa90   :  { %v932_v22 = vmul.f32 %v930_v21, %v930_v21 }
 0xa91   :  { %v931_v23 = vmul.f32 %v929_v6, %v929_v6 }
 0xa92   :  { %v936_v7 = vsel %vm48_vm0, %v932_v22, 0.0 }
 0xa93   :  { %937 = vadd.xlane.f32.xlu1 %v936_v7  ;;  %v933_v24 = vsel %vm48_vm0, %v931_v23, 0.0 }
 0xa94   :  { %934 = vadd.xlane.f32.xlu0 %v933_v24 }
 0xb20   :  { %v938_v31 = vpop.xlane.xlu1 %937 }
 0xb21   :  { %v940_v32 = vmul.f32 0.03125, %v938_v31  ;;  %v935_v33 = vpop.xlane.xlu0 %934 }
 0xb22   :  { %v939_v34 = vmul.f32 0.03125, %v935_v33 }
 0xb23   :  { %v942_v35 = vadd.f32 1e-05, %v940_v32 }
 0xb24   :  { %v941_v36 = vadd.f32 1e-05, %v939_v34 }
 0xb25   :  { %2299 = vrsqrt.f32 %v942_v35 }
 0xb26   :  { %2301 = vrsqrt.f32 %v941_v36 }
 0xb2f   :  { %v2300_v37 = vpop.eup %2299 }
 0xb30   :  { %v2302_v38 = vpop.eup %2301  ;;  %v946_v40 = vmul.f32 %v2300_v37, %v930_v21 }
 0xb31   :  { %v945_v41 = vmul.f32 %v2302_v38, %v929_v6 }
 0xb32   :  { %v952_v43 = vmul.f32 %v1824_v39, %v946_v40 }
 0xb33   :  { %v951_v44 = vmul.f32 %v1824_v39, %v945_v41 }
 0xb34   :  { %v958_v47 = vadd.f32 %v1825_v42, %v952_v43 }
 0xb35   :  { %v957_v46 = vadd.f32 %v1825_v42, %v951_v44 }
 0xb37   :  { %2027 = vmatprep.mubr.msk.f32.mxu1 %vm48_vm0, %v957_v46 }
 0xb38   :  { %2028 = vmatmul.mubr.msk.f32.vlgmr.msra.gmra.mrb[8].mxu1 %vm48_vm0, %v958_v47 }
 0xc0b   :  { %v2029_v48 = vpop.f32.mrb[8].mxu1 }
 0xc0c   :  { %v1036_v49 = vpop.f32.mrb[9].mxu1 }
 0xc0d   :  { %2034 = vmatprep.mubr.msk.f32.mxu1 %vm179_vm1, %v1036_v49  ;;  %v2542_v50 = vpack.i.bf16 %v2029_v48, %v1036_v49 }
 0xc0f   :  { %2257 = vrot.lane.b32.xlu1 %v2542_v50, %s2381_s0  ;;  %2252 = vrot.lane.b32.xlu0 %v2542_v50, %s2382_s2 }
 0xc13   :  { %1247 = vrot.lane.b32.xlu1 %v1036_v49, %s2383_s16 }
 0xc17   :  { %1249 = vrot.lane.b32.xlu1 %v2029_v48, %s2383_s16 }
 0xc81   :  { %v2258_v52 = vpop.permute.xlu1 %2257  ;;  %v2253_v53 = vpop.permute.xlu0 %2252 }
 0xc82   :  { %v2260_v55 = vunpack.i.h.bf16 %v2258_v52  ;;  %v2259_v56 = vunpack.i.l.bf16 %v2258_v52  ;;  %v2255_v57 = vunpack.i.h.bf16 %v2253_v53  ;;  %v2254_v58 = vunpack.i.l.bf16 %v2253_v53 }
 0xc84   :  { %v2167_v59 = vpack.c.bf16 %v2255_v57, %v2254_v58  ;;  %v2177_v60 = vpack.c.bf16 %v2260_v55, %v2259_v56  ;;  %v1462_v57 = vld [vmem:[#allocation2 + $0x108] sm:$0xff] }
 0xc85   :  { %v1248_v61 = vpop.permute.xlu1 %1247  ;;  %v1463_v58 = vld [vmem:[#allocation2 + $0x128] sm:$0xff] }
 0xc86   :  { %2169 = vmatprep.subr.msk.bf16.mxu1 %vm2462_vm2, %v2167_v59 }
 0xc87   :  { %2172 = vmatpush3.bf16.xpose.msk.msra.mxu1 %vm2462_vm2, %v2167_v59  ;;  %v2187_v59 = vpack.c.bf16 %v1463_v58, %v1462_v57  ;;  %v1700_v57 = vld [vmem:[#allocation2 + $0x1d8] sm:$0xff] }
 0xc88   :  { %2179 = vmatprep.subr.msk.bf16.mxu1 %vm2462_vm2, %v2177_v60  ;;  %v1701_v58 = vld [vmem:[#allocation2 + $0x1f8] sm:$0xff] }
 0xc89   :  { %v1250_v62 = vpop.permute.xlu1 %1249 }
 0xc8e   :  { %2035 = vmatmul.mubr.msk.f32.vlgmr.msra.gmra.mrb[10].mxu1 %vm179_vm1, %v2029_v48 }
 0xc8f   :  { %2182 = vmatpush3.bf16.xpose.msk.msra.mxu1 %vm2462_vm2, %v2177_v60  ;;  %2048 = vmatprep.mubr.msk.f32.mxu1 %vm179_vm1, %v1248_v61  ;;  %v1464_v60 = vld [vmem:[#allocation2 + $0x148] sm:$0xff] }
 0xc90   :  { %v1465_v61 = vld [vmem:[#allocation2 + $0x168] sm:$0xff] }
 0xc96   :  { %2049 = vmatmul.mubr.msk.f32.vlgmr.msra.gmra.mrb[12].mxu1 %vm179_vm1, %v1250_v62  ;;  %v2191_v62 = vpack.c.bf16 %v1465_v61, %v1464_v60  ;;  %v1845_v60 = vld [vmem:[#allocation4 + $0x1d] ss:$0 sm:$0xff] }
 0xd61   :  { %v2036_v63 = vpop.f32.mrb[10].mxu1 }
 0xd62   :  { %v1135_v2 = vmul.f32 0.25, %v2036_v63  ;;  %v1125_v3 = vpop.f32.mrb[11].mxu1 }
 0xd63   :  { %v1134_v4 = vmul.f32 0.25, %v1125_v3 }
 0xd64   :  { %v1137_v5 = vadd.f32 %v1135_v2, %v2477_v51 }
 0xd65   :  { %v1136_v8 = vadd.f32 %v1134_v4, %v2479_v54 }
 0xd66   :  { %v1141_v9 = vsel %vm179_vm1, %v1137_v5, -inf }
 0xd67   :  { %1142 = vmax.xlane.f32.xlu1 %v1141_v9  ;;  %v1138_v10 = vsel %vm179_vm1, %v1136_v8, -inf }
 0xd68   :  { %1139 = vmax.xlane.f32.xlu0 %v1138_v10 }
 0xd69   :  { %v2050_v45 = vpop.f32.mrb[12].mxu1 }
 0xd6a   :  { %v1329_v11 = vpop.f32.mrb[13].mxu1  ;;  %v1339_v12 = vmul.f32 0.25, %v2050_v45  ;;  %v1840_v45 = vld [vmem:[#allocation4 + $0x1a] ss:$0 sm:$0xff] }
 0xd6b   :  { %v1338_v13 = vmul.f32 0.25, %v1329_v11 }
 0xd6c   :  { %v1341_v16 = vadd.f32 %v1339_v12, %v2477_v51 }
 0xd6d   :  { %v1340_v14 = vadd.f32 %v1338_v13, %v2479_v54 }
 0xd6e   :  { %v1345_v17 = vsel %vm179_vm1, %v1341_v16, -inf }
 0xd6f   :  { %v1342_v0 = vsel %vm179_vm1, %v1340_v14, -inf }
 0xd70   :  { %1343 = vmax.xlane.f32.xlu0 %v1342_v0 }
 0xd74   :  { %1346 = vmax.xlane.f32.xlu0 %v1345_v17 }
 0xdf4   :  { %v1143_v18 = vpop.xlane.xlu1 %1142 }
 0xdf5   :  { %v1145_v19 = vsub.f32 %v1137_v5, %v1143_v18  ;;  %v1140_v20 = vpop.xlane.xlu0 %1139 }
 0xdf6   :  { %v1144_v21 = vsub.f32 %v1136_v8, %v1140_v20 }
 0xdf7   :  { %v1148_v6 = vmul.f32 1.442695, %v1145_v19 }
 0xdf8   :  { %v1146_v22 = vmul.f32 1.442695, %v1144_v21 }
 0xdf9   :  { %2303 = vpow2.f32 %v1148_v6 }
 0xdfa   :  { %2305 = vpow2.f32 %v1146_v22 }
 0xdfd   :  { %v1344_v23 = vpop.xlane.xlu0 %1343 }
 0xdfe   :  { %v1348_v7 = vsub.f32 %v1340_v14, %v1344_v23 }
 0xe00   :  { %v1350_v24 = vmul.f32 1.442695, %v1348_v7 }
 0xe01   :  { %v1347_v54 = vpop.xlane.xlu0 %1346 }
 0xe02   :  { %2307 = vpow2.f32 %v1350_v24  ;;  %v1349_v25 = vsub.f32 %v1341_v16, %v1347_v54  ;;  %v1594_v54 = vld [vmem:[#allocation2 + $0x110] sm:$0xff] }
 0xe03   :  { %v2304_v26 = vpop.eup %2303 }
 0xe04   :  { %v2306_v51 = vpop.eup %2305  ;;  %v1352_v27 = vmul.f32 1.442695, %v1349_v25  ;;  %v1153_v28 = vsel %vm179_vm1, %v2304_v26, 0.0  ;;  %v1595_v25 = vld [vmem:[#allocation2 + $0x130] sm:$0xff] }
 0xe05   :  { %1154 = vadd.xlane.f32.xlu1 %v1153_v28  ;;  %v1150_v29 = vsel %vm179_vm1, %v2306_v51, 0.0 }
 0xe06   :  { %2309 = vpow2.f32 %v1352_v27  ;;  %1151 = vadd.xlane.f32.xlu0 %v1150_v29  ;;  %v1597_v27 = vld [vmem:[#allocation2 + $0x170] sm:$0xff] }
 0xe0c   :  { %v2308_v30 = vpop.eup %2307 }
 0xe0d   :  { %v1354_v31 = vsel %vm179_vm1, %v2308_v30, 0.0 }
 0xe0e   :  { %1355 = vadd.xlane.f32.xlu0 %v1354_v31 }
 0xe10   :  { %v2310_v32 = vpop.eup %2309 }
 0xe11   :  { %v1357_v33 = vsel %vm179_vm1, %v2310_v32, 0.0 }
 0xe12   :  { %1358 = vadd.xlane.f32.xlu1 %v1357_v33 }
 0xe23   :  { %2267 = vrot.lane.b32.xlu1 %v2542_v50, %s2384_s17 }
 0xe24   :  { %2262 = vrot.lane.b32.xlu0 %v2542_v50, %s2385_s18 }
 0xe92   :  { %v1155_v35 = vpop.xlane.xlu1 %1154 }
 0xe93   :  { %v1152_v34 = vpop.xlane.xlu0 %1151 }
 0xe94   :  { %2311 = vrcp.f32 %v1152_v34 }
 0xe95   :  { %2313 = vrcp.f32 %v1155_v35 }
 0xe9b   :  { %v1356_v36 = vpop.xlane.xlu0 %1355 }
 0xe9c   :  { %2315 = vrcp.f32 %v1356_v36  ;;  %v1843_v36 = vld [vmem:[#allocation4 + $0x1b] ss:$0 sm:$0xff] }
 0xe9e   :  { %v2312_v37 = vpop.eup %2311 }
 0xe9f   :  { %v1359_v39 = vpop.xlane.xlu1 %1358  ;;  %v2263_v38 = vpop.permute.xlu0 %2262  ;;  %v1158_v40 = vmul.f32 %v2312_v37, %v2306_v51  ;;  %v1596_v51 = vld [vmem:[#allocation2 + $0x150] sm:$0xff] }
 0xea0   :  { %2317 = vrcp.f32 %v1359_v39  ;;  %v2265_v41 = vunpack.i.h.bf16 %v2263_v38  ;;  %v2264_v42 = vunpack.i.l.bf16 %v2263_v38  ;;  %v2314_v44 = vpop.eup %2313  ;;  %v2199_v28 = vpack.c.bf16 %v1597_v27, %v1596_v51  ;;  %v1844_v39 = vld [vmem:[#allocation4 + $0x1c] ss:$0 sm:$0xff] }
 0xea1   :  { %2041 = vmatprep.mubr.msk.f32.mxu0 %vm179_vm1, %v1158_v40  ;;  %v1159_v50 = vmul.f32 %v2314_v44, %v2304_v26  ;;  %v2195_v26 = vpack.c.bf16 %v1595_v25, %v1594_v54 }
 0xea2   :  { %v2173_v43 = vpack.c.bf16 %v2265_v41, %v2264_v42 }
 0xea3   :  { %v2268_v46 = vpop.permute.xlu1 %2267  ;;  %2196 = vmatprep.subr.bf16.mxu1 %v2195_v26 }
 0xea4   :  { %v2270_v47 = vunpack.i.h.bf16 %v2268_v46  ;;  %v2269_v48 = vunpack.i.l.bf16 %v2268_v46  ;;  %2174 = vmatprep.subr.bf16.mxu0 %v2173_v43  ;;  %2198 = vmatpush3.bf16.msra.mxu1 %v2195_v26  ;;  %v1694_v46 = vld [vmem:[#allocation2 + $0x118] sm:$0xff] }
 0xea5   :  { %2176 = vmatpush3.bf16.msra.mxu0 %v2173_v43  ;;  %2200 = vmatprep.subr.bf16.mxu1 %v2199_v28 }
 0xea6   :  { %v2316_v49 = vpop.eup %2315  ;;  %v2183_v52 = vpack.c.bf16 %v2270_v47, %v2269_v48  ;;  %v1695_v47 = vld [vmem:[#allocation2 + $0x138] sm:$0xff] }
 0xea7   :  { %v1362_v53 = vmul.f32 %v2316_v49, %v2308_v30  ;;  %v2203_v48 = vpack.c.bf16 %v1695_v47, %v1694_v46  ;;  %v1696_v49 = vld [vmem:[#allocation2 + $0x158] sm:$0xff] }
 0xea8   :  { %2042 = vmatmul.mubr.msk.f32.vlgmr.msra.gmra.mrb[8].mxu0 %vm179_vm1, %v1159_v50  ;;  %2184 = vmatprep.subr.bf16.mxu0 %v2183_v52  ;;  %v1697_v50 = vld [vmem:[#allocation2 + $0x178] sm:$0xff] }
 0xea9   :  { %2186 = vmatpush3.bf16.msra.mxu0 %v2183_v52  ;;  %2055 = vmatprep.mubr.msk.f32.mxu0 %vm179_vm1, %v1362_v53  ;;  %v2207_v52 = vpack.c.bf16 %v1697_v50, %v1696_v49  ;;  %v1698_v53 = vld [vmem:[#allocation2 + $0x198] sm:$0xff] }
 0xeaa   :  { %v2318_v55 = vpop.eup %2317  ;;  %2188 = vmatprep.subr.bf16.mxu0 %v2187_v59  ;;  %2202 = vmatpush3.bf16.msra.mxu1 %v2199_v28 }
 0xeab   :  { %v1363_v56 = vmul.f32 %v2318_v55, %v2310_v32  ;;  %v1699_v55 = vld [vmem:[#allocation2 + $0x1b8] sm:$0xff] }
 0xead   :  { %2056 = vmatmul.mubr.msk.f32.vlgmr.msra.gmra.mrb[10].mxu0 %vm179_vm1, %v1363_v56  ;;  %v2211_v56 = vpack.c.bf16 %v1699_v55, %v1698_v53 }
 0xeae   :  { %2190 = vmatpush3.bf16.msra.mxu0 %v2187_v59  ;;  %v2215_v59 = vpack.c.bf16 %v1701_v58, %v1700_v57 }
 0xeaf   :  { %2192 = vmatprep.subr.bf16.mxu0 %v2191_v62 }
 0xeb2   :  { %2194 = vmatpush3.bf16.msra.mxu0 %v2191_v62 }
 0xeb3   :  { %2204 = vmatprep.subr.bf16.mxu0 %v2203_v48 }
 0xf7b   :  { %v2043_v63 = vpop.f32.mrb[8].mxu0 }
 0xf7c   :  { %v1238_v2 = vpop.f32.mrb[9].mxu0 }
 0xf80   :  { %v2057_v3 = vpop.f32.mrb[10].mxu0 }
 0xf81   :  { %v1442_v4 = vpop.f32.mrb[11].mxu0 }
 0xf82   :  { %1453 = vrot.lane.b32.xlu1 %v1442_v4, %s2386_s19 }
 0xf86   :  { %1455 = vrot.lane.b32.xlu1 %v2057_v3, %s2386_s19 }
 0xff4   :  { %v1454_v5 = vpop.permute.xlu1 %1453 }
 0xff5   :  { %v1459_v8 = vsel %vm179_vm1, %v1238_v2, %v1454_v5 }
 0xff6   :  { %2066 = vmatprep.mubr.msk.f32.mxu0 %vm48_vm0, %v1459_v8 }
 0xff8   :  { %v1456_v9 = vpop.permute.xlu1 %1455 }
 0xff9   :  { %v1460_v10 = vsel %vm179_vm1, %v2043_v63, %v1456_v9 }
 0xffa   :  { %2067 = vmatmul.mubr.msk.f32.vlgmr.msra.gmra.mrb[12].mxu0 %vm48_vm0, %v1460_v10 }
 0xffb   :  { %2206 = vmatpush3.bf16.msra.mxu0 %v2203_v48 }
 0xffc   :  { %2208 = vmatprep.subr.bf16.mxu0 %v2207_v52 }
 0xfff   :  { %2210 = vmatpush3.bf16.msra.mxu0 %v2207_v52 }
0x1000   :  { %2212 = vmatprep.subr.bf16.mxu0 %v2211_v56 }
0x1003   :  { %2214 = vmatpush3.bf16.msra.mxu0 %v2211_v56 }
0x1004   :  { %2216 = vmatprep.subr.bf16.mxu0 %v2215_v59 }
0x1007   :  { %2218 = vmatpush3.bf16.msra.mxu0 %v2215_v59 }
0x10cd   :  { %v2068_v11 = vpop.f32.mrb[12].mxu0 }
0x10ce   :  { %v1548_v12 = vadd.f32 %v2068_v11, %v1840_v45  ;;  %v1542_v13 = vpop.f32.mrb[13].mxu0 }
0x10cf   :  { %v1543_v14 = vadd.f32 %v1840_v45, %v1542_v13 }
0x10d0   :  { %v2588_v0 = vadd.f32 %v1548_v12, %v2526_v1 }
0x10d1   :  { %v2591_v16 = vadd.f32 %v1543_v14, %v2529_v15  ;;  %v1848_v14 = vld [vmem:[#allocation4 + $0x1e] ss:$0 sm:$0xff] }
0x10d2   :  { %v1558_v17 = vsel %vm48_vm0, %v2588_v0, 0.0 }
0x10d3   :  { %1559 = vadd.xlane.f32.xlu1 %v1558_v17  ;;  %v1555_v18 = vsel %vm48_vm0, %v2591_v16, 0.0 }
0x10d4   :  { %1556 = vadd.xlane.f32.xlu0 %v1555_v18 }
0x1160   :  { %v1560_v19 = vpop.xlane.xlu1 %1559 }
0x1161   :  { %v1562_v20 = vmul.f32 0.03125, %v1560_v19  ;;  %v1557_v21 = vpop.xlane.xlu0 %1556 }
0x1162   :  { %v1561_v6 = vmul.f32 0.03125, %v1557_v21 }
0x1163   :  { %v1564_v22 = vsub.f32 %v2588_v0, %v1562_v20 }
0x1164   :  { %v1563_v1 = vsub.f32 %v2591_v16, %v1561_v6 }
0x1165   :  { %v1566_v7 = vmul.f32 %v1564_v22, %v1564_v22 }
0x1166   :  { %v1565_v23 = vmul.f32 %v1563_v1, %v1563_v1 }
0x1167   :  { %v1570_v24 = vsel %vm48_vm0, %v1566_v7, 0.0 }
0x1168   :  { %v1567_v15 = vsel %vm48_vm0, %v1565_v23, 0.0 }
0x1169   :  { %1568 = vadd.xlane.f32.xlu0 %v1567_v15 }
0x116d   :  { %1571 = vadd.xlane.f32.xlu0 %v1570_v24 }
0x11f6   :  { %v1569_v29 = vpop.xlane.xlu0 %1568 }
0x11f7   :  { %v1573_v30 = vmul.f32 0.03125, %v1569_v29 }
0x11f9   :  { %v1575_v31 = vadd.f32 1e-05, %v1573_v30 }
0x11fa   :  { %v1572_v32 = vpop.xlane.xlu0 %1571 }
0x11fb   :  { %2319 = vrsqrt.f32 %v1575_v31  ;;  %v1574_v33 = vmul.f32 0.03125, %v1572_v32 }
0x11fd   :  { %v1576_v34 = vadd.f32 1e-05, %v1574_v33 }
0x11ff   :  { %2321 = vrsqrt.f32 %v1576_v34 }
0x1205   :  { %v2320_v35 = vpop.eup %2319 }
0x1206   :  { %v1579_v37 = vmul.f32 %v2320_v35, %v1563_v1 }
0x1208   :  { %v1585_v38 = vmul.f32 %v1843_v36, %v1579_v37 }
0x1209   :  { %v2322_v40 = vpop.eup %2321 }
0x120a   :  { %v1580_v41 = vmul.f32 %v2322_v40, %v1564_v22  ;;  %v1591_v42 = vadd.f32 %v1844_v39, %v1585_v38 }
0x120c   :  { %v1586_v43 = vmul.f32 %v1843_v36, %v1580_v41  ;;  %2077 = vmatprep.mubr.msk.f32.mxu1 %vm48_vm0, %v1591_v42 }
0x120e   :  { %v1592_v44 = vadd.f32 %v1844_v39, %v1586_v43 }
0x1210   :  { %2078 = vmatmul.mubr.msk.f32.vlgmr.msra.gmra.mrb[14].mxu1 %vm48_vm0, %v1592_v44 }
0x12e3   :  { %v2079_v61 = vpop.f32.mrb[14].mxu1 }
0x12e4   :  { %v1680_v62 = vadd.f32 %v2079_v61, %v1845_v60  ;;  %v1674_v63 = vpop.f32.mrb[15].mxu1 }
0x12e5   :  { %v1675_v2 = vadd.f32 %v1845_v60, %v1674_v63 }
0x12e6   :  { %v1686_v3 = vmul.f32 0.70710677, %v1680_v62  ;;  %v1684_v11 = vmul.f32 0.5, %v1680_v62 }
0x12e7   :  { %v1685_v4 = vmul.f32 0.70710677, %v1675_v2  ;;  %v1683_v10 = vmul.f32 0.5, %v1675_v2 }
0x12e8   :  { %2323 = verf.f32 %v1686_v3 }
0x12e9   :  { %2325 = verf.f32 %v1685_v4 }
0x12f2   :  { %v2324_v5 = vpop.eup %2323 }
0x12f3   :  { %v2326_v8 = vpop.eup %2325  ;;  %v1690_v9 = vadd.f32 1.0, %v2324_v5 }
0x12f4   :  { %v1689_v45 = vadd.f32 1.0, %v2326_v8 }
0x12f5   :  { %v1692_v13 = vmul.f32 %v1690_v9, %v1684_v11 }
0x12f6   :  { %v1691_v12 = vmul.f32 %v1689_v45, %v1683_v10 }
0x12f8   :  { %2096 = vmatprep.mubr.msk.f32.mxu0 %vm835_vm3, %v1691_v12 }
0x12f9   :  { %2097 = vmatmul.mubr.msk.f32.vlgmr.msra.gmra.mrb[14].mxu0 %vm835_vm3, %v1692_v13 }
0x13cc   :  { %v2098_v17 = vpop.f32.mrb[14].mxu0 }
0x13cd   :  { %v1784_v18 = vadd.f32 %v2098_v17, %v1848_v14  ;;  %v1778_v19 = vpop.f32.mrb[15].mxu0 }
0x13ce   :  { %v1779_v20 = vadd.f32 %v1848_v14, %v1778_v19 }
0x13cf   :  { %v1788_v21 = vadd.f32 %v1784_v18, %v2588_v0 }
0x13d0   :  { %v1787_v6 = vadd.f32 %v1779_v20, %v2591_v16 }
0x13d1   :  { %1790 = vst.msk [vmem:[%s2618_s3 + $0x8] sm:$0xff] %vm48_vm0, %v1788_v21 }
0x13d2   :  { %1789 = vst.msk [vmem:[%s2618_s3] sm:$0xff] %vm48_vm0, %v1787_v6 }
0x13d3   :  { %1795 = vsyncpa [#allocation3], 1 }
0x13d4   :  { %1796 = vsyncpa [#allocation5], 1 }

</bundles_post_ra>
